<compile_context>
chip_gen: v5e
topology: v5e:2x2
jax: 0.10.0
libtpu: 0.0.40
codegen_flags: <defaults>
</compile_context>

<pallas_src>
import functools

import numpy as np
import jax
import jax.numpy as jnp
from jax.experimental import pallas as pl
from jax.experimental.pallas import tpu as pltpu


INPUT_H = 16
INPUT_W = 16
EMBED_DIM = 32
EXPECTED_FINAL_H = 2
EXPECTED_FINAL_W = 2
BN_EPS = 1e-5
ROW_PAD = 8  # pad the batch-row axis to a full sublane tile


# --------------------------------------------------------------------------
# Pallas kernel: the whole network, fused (4 matmul + shift + SiLU stages)
# --------------------------------------------------------------------------
def _make_fused_kernel(layout):
    """layout: 4 static (r0, r1, c0, c1) windows into the packed bf16 weight slab."""

    def kernel(x_ref, w_ref, b_ref, o_ref):
        def silu(y):
            # EUP-friendly SiLU: exp + approx reciprocal keep the divide off the VALU.
            return y * pl.reciprocal(1.0 + jnp.exp(-y), approx=True)

        h = x_ref[...]                                            # (8, 768) f32
        for i, (r0, r1, c0, c1) in enumerate(layout):
            w = w_ref[r0:r1, c0:c1]                               # static, (16,128)-aligned view
            shift = b_ref[i:i + 1, 0:c1 - c0]                     # (1, width) f32 shift row
            y = jnp.dot(h.astype(w.dtype), w,
                        preferred_element_type=jnp.float32) + shift
            h = silu(y)
        o_ref[...] = h.astype(o_ref.dtype)

    return kernel


def fused_forward(x_rows, w_slab, b_slab, layout, n_out):
    # Grid-less call: whole arrays resident in VMEM, no double buffering, 3 input DMAs.
    vmem = pl.BlockSpec(memory_space=pltpu.MemorySpace.VMEM)
    return pl.pallas_call(
        _make_fused_kernel(layout),
        out_shape=jax.ShapeDtypeStruct((x_rows.shape[0], n_out), jnp.float32),
        in_specs=[vmem, vmem, vmem],
        out_specs=vmem,
    )(x_rows, w_slab, b_slab)


# --------------------------------------------------------------------------
# Init-time lowering: conv (with stride/padding) -> dense matrix on flat image
# --------------------------------------------------------------------------
def _conv_as_matrix(w, hin, win, stride, pad, in_layout):
    """Dense matrix for Conv2d acting on a flattened image vector.

    w: (kh, kw, cin, cout).  Input vector flattened 'chw' or 'hwc';
    output vector flattened 'hwc' (position-major, channel-minor)."""
    kh, kw, cin, cout = w.shape
    ho = (hin + 2 * pad - kh) // stride + 1
    wo = (win + 2 * pad - kw) // stride + 1
    m = np.zeros((hin * win * cin, ho * wo * cout), np.float32)
    for oh in range(ho):
        for ow in range(wo):
            col = (oh * wo + ow) * cout
            for di in range(kh):
                ih = oh * stride + di - pad
                if ih < 0 or ih >= hin:
                    continue
                for dj in range(kw):
                    iw = ow * stride + dj - pad
                    if iw < 0 or iw >= win:
                        continue
                    for ci in range(cin):
                        if in_layout == "chw":
                            row = (ci * hin + ih) * win + iw
                        else:  # "hwc"
                            row = (ih * win + iw) * cin + ci
                        m[row, col:col + cout] += w[di, dj, ci, :]
    return m, ho, wo


def _pack_slabs(mats, shifts):
    """Pack the 4 folded stage matrices into one bf16 slab (shelf layout aligned to the
    bf16 (16, 128) tile) and the 4 shift vectors into one (8, W) f32 slab."""
    SUB, LANE = 16, 128
    rup = lambda v, m: -(-v // m) * m
    m1, m2, m3, m4 = mats

    r_shelf = rup(m1.shape[0], SUB)               # m2/m3/m4 shelf starts below m1
    c_side = rup(m2.shape[1], LANE)               # m3/m4 sit to the right of m2
    pos = [(0, 0),
           (r_shelf, 0),
           (r_shelf, c_side),
           (r_shelf + rup(m3.shape[0], SUB), c_side)]
    n_rows = rup(max(r + m.shape[0] for (r, _), m in zip(pos, mats)), SUB)
    n_cols = rup(max(c + m.shape[1] for (_, c), m in zip(pos, mats)), LANE)

    slab = np.zeros((n_rows, n_cols), np.float32)
    layout = []
    for (r, c), m in zip(pos, mats):
        slab[r:r + m.shape[0], c:c + m.shape[1]] = m
        layout.append((r, r + m.shape[0], c, c + m.shape[1]))

    bcols = rup(max(s.shape[0] for s in shifts), LANE)
    bslab = np.zeros((8, bcols), np.float32)
    for i, s in enumerate(shifts):
        bslab[i, :s.shape[0]] = s

    return (jnp.asarray(slab, jnp.bfloat16),
            jnp.asarray(bslab, jnp.float32),
            tuple(layout))


def prepare_fused_operators(params):
    """Fold the whole network into 4 dense (matrix, shift) stages and pack them. Done ONCE."""
    b1, b2, emb = params["block1"], params["block2"], params["emb"]

    def np32(a):
        return np.asarray(a, np.float32)

    def bn_fold(bp):
        scale = np32(bp["gamma"]) / np.sqrt(np32(bp["var"]) + BN_EPS)
        shift = np32(bp["beta"]) + (np32(bp["b1"]) - np32(bp["mean"])) * scale
        return np32(bp["w1"]) * scale[None, None, None, :], shift

    # --- raw per-layer matrices (conv -> dense matrix on the flattened image) ---
    w1s, sh1 = bn_fold(b1)                                           # block1 conv1 + BN
    a1, h, w = _conv_as_matrix(w1s, INPUT_H, INPUT_W, 2, 2, "chw")
    s1 = np.tile(sh1, h * w)
    a2, h, w = _conv_as_matrix(np32(b1["w2"]), h, w, 2, 0, "hwc")    # block1 conv2
    s2 = np.tile(np32(b1["b2"]), h * w)
    w3s, sh3 = bn_fold(b2)                                           # block2 conv1 + BN
    a3, h, w = _conv_as_matrix(w3s, h, w, 1, 1, "hwc")
    s3 = np.tile(sh3, h * w)
    a4, h, w = _conv_as_matrix(np32(b2["w2"]), h, w, 2, 0, "hwc")    # block2 conv2
    s4 = np.tile(np32(b2["b2"]), h * w)

    if (h, w) != (EXPECTED_FINAL_H, EXPECTED_FINAL_W):
        # Matches the PyTorch module's behaviour (warning only). The embedding block-diagonal
        # matrices below are built from the *actual* npos, so shapes stay consistent anyway.
        print(f"Warning: Expected final size ({EXPECTED_FINAL_H}, {EXPECTED_FINAL_W}), "
              f"got ({h}, {w})")

    # embedding head: per-position Linear(16->32)+SiLU, Linear(32->32)+SiLU (Dropout eval=id)
    npos = h * w
    e1 = np.kron(np.eye(npos, dtype=np.float32), np32(emb["w1"]))
    t1 = np.tile(np32(emb["b1"]), npos)
    e2 = np.kron(np.eye(npos, dtype=np.float32), np32(emb["w2"]))
    t2 = np.tile(np32(emb["b2"]), npos)

    # --- init-time stage folding (no activation between the folded pairs):
    #     conv2 folded into conv3, conv4 folded into Linear1 -> 4 serial matmuls, all + SiLU ---
    mats = [a1, a2 @ a3, a4 @ e1, e2]
    shifts = [s1, s2 @ a3 + s3, s4 @ e1 + t1, t2]
    # TODO(synk): a1 is still ~90% structural zeros; an in-kernel im2col for conv1 would cut
    #             its bytes further (mainly a v5e HBM-BW win) but is not needed at this size.

    w_slab, b_slab, layout = _pack_slabs(mats, shifts)
    return dict(w_slab=w_slab, b_slab=b_slab, layout=layout,
                npos=npos, n_out=npos * EMBED_DIM)


# --------------------------------------------------------------------------
# Parameters (raw, PyTorch-like; eval-mode BN statistics)
# --------------------------------------------------------------------------
def init_feature_extractor(key):
    ks = jax.random.split(key, 6)

    def nrm(k, shape, s=0.05):
        return s * jax.random.normal(k, shape, jnp.float32)

    def conv_block(kblk, cin, cout, ksize):
        k1, k2, k3, k4, k5, k6, k7, k8 = jax.random.split(kblk, 8)
        return dict(
            w1=nrm(k1, (ksize, ksize, cin, cout)),
            b1=nrm(k2, (cout,)),
            gamma=1.0 + 0.1 * jax.random.normal(k3, (cout,), jnp.float32),
            beta=nrm(k4, (cout,), 0.1),
            mean=nrm(k5, (cout,), 0.1),
            var=1.0 + 0.1 * jnp.abs(jax.random.normal(k6, (cout,), jnp.float32)),
            w2=nrm(k7, (2, 2, cout, cout)),
            b2=nrm(k8, (cout,)),
        )

    return dict(
        block1=conv_block(ks[0], 3, 8, 5),     # Conv2dBlock(3, 8, 5, 2, 2)
        block2=conv_block(ks[1], 8, 16, 3),    # Conv2dBlock(8, 16, 3, 1, 1)
        emb=dict(w1=nrm(ks[2], (16, EMBED_DIM)), b1=nrm(ks[3], (EMBED_DIM,)),
                 w2=nrm(ks[4], (EMBED_DIM, EMBED_DIM)), b2=nrm(ks[5], (EMBED_DIM,))),
    )


# --------------------------------------------------------------------------
# Forward wrapper (only reshape / row-pad / slice outside the single kernel)
# --------------------------------------------------------------------------
def feature_extractor_forward(x_nchw, w_slab, b_slab, *, layout, npos):
    if x_nchw.shape[-2] != INPUT_H or x_nchw.shape[-1] != INPUT_W:
        raise ValueError(f"Expected input size ({INPUT_H}, {INPUT_W}), "
                         f"got ({x_nchw.shape[-2]}, {x_nchw.shape[-1]})")
    b = x_nchw.shape[0]
    x_rows = x_nchw.reshape(b, -1).astype(jnp.float32)   # (B, C*H*W) 'chw' flattening
    pad = (-b) % ROW_PAD
    if pad:
        x_rows = jnp.pad(x_rows, ((0, pad), (0, 0)))     # full sublane tile for the matmuls
    # NOTE(perf): weights are fetched once per call, so throughput scales ~linearly with the
    # batch up to ~256 rows; for large batches (esp. v7x with 2 TensorCores) add a row-block
    # grid axis marked "parallel" instead of a single monolithic call.
    out = fused_forward(x_rows, w_slab, b_slab, layout, npos * EMBED_DIM)[:b]
    # matches PyTorch: view(B, C, H*W).permute(0, 2, 1) -> (B, H*W, C) ordering
    return out.reshape(b, npos, EMBED_DIM)


# --------------------------------------------------------------------------
# Pure-JAX reference (standard convs, no Pallas, f32) for correctness
# --------------------------------------------------------------------------
def _silu(v):
    return v * jax.nn.sigmoid(v)


def _ref_conv(x, w, b, stride, pad):
    y = jax.lax.conv_general_dilated(
        x, w, (stride, stride), [(pad, pad), (pad, pad)],
        dimension_numbers=("NCHW", "HWIO", "NCHW"),
        precision=jax.lax.Precision.HIGHEST)
    return y + b.reshape(1, -1, 1, 1)


def _ref_block(x, bp, stride, pad):
    y = _ref_conv(x, bp["w1"], bp["b1"], stride, pad)
    c = y.shape[1]
    scale = (bp["gamma"] / jnp.sqrt(bp["var"] + BN_EPS)).reshape(1, c, 1, 1)
    y = (y - bp["mean"].reshape(1, c, 1, 1)) * scale + bp["beta"].reshape(1, c, 1, 1)
    y = _silu(y)
    return _ref_conv(y, bp["w2"], bp["b2"], 2, 0)   # Dropout eval = identity


def _ref_forward(x_nchw, params):
    x = _ref_block(x_nchw, params["block1"], 2, 2)
    x = _ref_block(x, params["block2"], 1, 1)
    bsz, c, hh, ww = x.shape
    f = jnp.transpose(x.reshape(bsz, c, hh * ww), (0, 2, 1))
    emb = params["emb"]
    h = _silu(jnp.matmul(f, emb["w1"], precision=jax.lax.Precision.HIGHEST) + emb["b1"])
    o = _silu(jnp.matmul(h, emb["w2"], precision=jax.lax.Precision.HIGHEST) + emb["b2"])
    return o


# --------------------------------------------------------------------------
if __name__ == "__main__":
    key = jax.random.PRNGKey(0)
    k_x, k_p = jax.random.split(key)
    x = jax.random.normal(k_x, (2, 3, INPUT_H, INPUT_W), jnp.float32)  # NCHW input
    params = init_feature_extractor(k_p)
    ops = prepare_fused_operators(params)     # one-time weight folding + packing (host side)

    fwd = jax.jit(functools.partial(feature_extractor_forward,
                                    layout=ops["layout"], npos=ops["npos"]))
    out = jax.block_until_ready(fwd(x, ops["w_slab"], ops["b_slab"]))

    ref = _ref_forward(x, params)
    assert out.shape == (2, EXPECTED_FINAL_H * EXPECTED_FINAL_W, EMBED_DIM), out.shape
    max_err = float(jnp.max(jnp.abs(out - ref)))
    # bf16 weight slab + approx-reciprocal SiLU -> slightly looser tolerance than pure f32.
    assert jnp.allclose(out, ref, atol=5e-3, rtol=2e-2), \
        f"mismatch vs reference (max abs err {max_err})"

    print("KERNEL_OK")
</pallas_src>

<mosaic_0001>
module attributes {stable_mosaic.version = 11 : i64} {
  func.func @kernel(%arg0: memref<8x768xf32, #tpu.memory_space<vmem>>, %arg1: memref<1280x512xbf16, #tpu.memory_space<vmem>>, %arg2: memref<8x512xf32, #tpu.memory_space<vmem>>, %arg3: memref<8x128xf32, #tpu.memory_space<vmem>>) attributes {dimension_semantics = [], scalar_prefetch = 0 : i64, scratch_operands = 0 : i64, tpu.core_type = #tpu.core_type<tc>} {
    %c0 = arith.constant 0 : index
    %c0_0 = arith.constant 0 : index
    %0 = vector.load %arg0[%c0, %c0_0] : memref<8x768xf32, #tpu.memory_space<vmem>>, vector<8x768xf32>
    %c0_1 = arith.constant 0 : index
    %c0_2 = arith.constant 0 : index
    %1 = vector.load %arg1[%c0_1, %c0_2] : memref<1280x512xbf16, #tpu.memory_space<vmem>>, vector<768x512xbf16>
    %c0_3 = arith.constant 0 : index
    %c0_4 = arith.constant 0 : index
    %2 = vector.load %arg2[%c0_3, %c0_4] : memref<8x512xf32, #tpu.memory_space<vmem>>, vector<1x512xf32>
    %3 = arith.truncf %0 : vector<8x768xf32> to vector<8x768xbf16>
    %cst = arith.constant dense<0.000000e+00> : vector<8x512xf32>
    %4 = tpu.matmul %3, %1, %cst {dimension_numbers = #tpu.dot_dimension_numbers<[1], [0], [0], [1], [0, 0, 1, 1], [], []>} : vector<8x768xbf16>, vector<768x512xbf16>, vector<8x512xf32> -> vector<8x512xf32>
    %5 = vector.broadcast %2 : vector<1x512xf32> to vector<8x512xf32>
    %6 = arith.addf %4, %5 : vector<8x512xf32>
    %cst_5 = arith.constant 0.000000e+00 : f32
    %7 = vector.broadcast %cst_5 : f32 to vector<8x512xf32>
    %8 = arith.subf %7, %6 : vector<8x512xf32>
    %9 = math.exp %8 : vector<8x512xf32>
    %cst_6 = arith.constant 1.000000e+00 : f32
    %10 = vector.broadcast %cst_6 : f32 to vector<8x512xf32>
    %11 = arith.addf %10, %9 : vector<8x512xf32>
    %12 = tpu.reciprocal %11 {approx = true} : vector<8x512xf32> -> vector<8x512xf32>
    %13 = arith.mulf %6, %12 : vector<8x512xf32>
    %c768 = arith.constant 768 : index
    %c0_7 = arith.constant 0 : index
    %14 = vector.load %arg1[%c768, %c0_7] : memref<1280x512xbf16, #tpu.memory_space<vmem>>, vector<512x256xbf16>
    %c1 = arith.constant 1 : index
    %c0_8 = arith.constant 0 : index
    %15 = vector.load %arg2[%c1, %c0_8] : memref<8x512xf32, #tpu.memory_space<vmem>>, vector<1x256xf32>
    %16 = arith.truncf %13 : vector<8x512xf32> to vector<8x512xbf16>
    %cst_9 = arith.constant dense<0.000000e+00> : vector<8x256xf32>
    %17 = tpu.matmul %16, %14, %cst_9 {dimension_numbers = #tpu.dot_dimension_numbers<[1], [0], [0], [1], [0, 0, 1, 1], [], []>} : vector<8x512xbf16>, vector<512x256xbf16>, vector<8x256xf32> -> vector<8x256xf32>
    %18 = vector.broadcast %15 : vector<1x256xf32> to vector<8x256xf32>
    %19 = arith.addf %17, %18 : vector<8x256xf32>
    %cst_10 = arith.constant 0.000000e+00 : f32
    %20 = vector.broadcast %cst_10 : f32 to vector<8x256xf32>
    %21 = arith.subf %20, %19 : vector<8x256xf32>
    %22 = math.exp %21 : vector<8x256xf32>
    %cst_11 = arith.constant 1.000000e+00 : f32
    %23 = vector.broadcast %cst_11 : f32 to vector<8x256xf32>
    %24 = arith.addf %23, %22 : vector<8x256xf32>
    %25 = tpu.reciprocal %24 {approx = true} : vector<8x256xf32> -> vector<8x256xf32>
    %26 = arith.mulf %19, %25 : vector<8x256xf32>
    %c768_12 = arith.constant 768 : index
    %c256 = arith.constant 256 : index
    %27 = vector.load %arg1[%c768_12, %c256] : memref<1280x512xbf16, #tpu.memory_space<vmem>>, vector<256x128xbf16>
    %c2 = arith.constant 2 : index
    %c0_13 = arith.constant 0 : index
    %28 = vector.load %arg2[%c2, %c0_13] : memref<8x512xf32, #tpu.memory_space<vmem>>, vector<1x128xf32>
    %29 = arith.truncf %26 : vector<8x256xf32> to vector<8x256xbf16>
    %cst_14 = arith.constant dense<0.000000e+00> : vector<8x128xf32>
    %30 = tpu.matmul %29, %27, %cst_14 {dimension_numbers = #tpu.dot_dimension_numbers<[1], [0], [0], [1], [0, 0, 1, 1], [], []>} : vector<8x256xbf16>, vector<256x128xbf16>, vector<8x128xf32> -> vector<8x128xf32>
    %31 = vector.broadcast %28 : vector<1x128xf32> to vector<8x128xf32>
    %32 = arith.addf %30, %31 : vector<8x128xf32>
    %cst_15 = arith.constant 0.000000e+00 : f32
    %33 = vector.broadcast %cst_15 : f32 to vector<8x128xf32>
    %34 = arith.subf %33, %32 : vector<8x128xf32>
    %35 = math.exp %34 : vector<8x128xf32>
    %cst_16 = arith.constant 1.000000e+00 : f32
    %36 = vector.broadcast %cst_16 : f32 to vector<8x128xf32>
    %37 = arith.addf %36, %35 : vector<8x128xf32>
    %38 = tpu.reciprocal %37 {approx = true} : vector<8x128xf32> -> vector<8x128xf32>
    %39 = arith.mulf %32, %38 : vector<8x128xf32>
    %c1024 = arith.constant 1024 : index
    %c256_17 = arith.constant 256 : index
    %40 = vector.load %arg1[%c1024, %c256_17] : memref<1280x512xbf16, #tpu.memory_space<vmem>>, vector<128x128xbf16>
    %c3 = arith.constant 3 : index
    %c0_18 = arith.constant 0 : index
    %41 = vector.load %arg2[%c3, %c0_18] : memref<8x512xf32, #tpu.memory_space<vmem>>, vector<1x128xf32>
    %42 = arith.truncf %39 : vector<8x128xf32> to vector<8x128xbf16>
    %cst_19 = arith.constant dense<0.000000e+00> : vector<8x128xf32>
    %43 = tpu.matmul %42, %40, %cst_19 {dimension_numbers = #tpu.dot_dimension_numbers<[1], [0], [0], [1], [0, 0, 1, 1], [], []>} : vector<8x128xbf16>, vector<128x128xbf16>, vector<8x128xf32> -> vector<8x128xf32>
    %44 = vector.broadcast %41 : vector<1x128xf32> to vector<8x128xf32>
    %45 = arith.addf %43, %44 : vector<8x128xf32>
    %cst_20 = arith.constant 0.000000e+00 : f32
    %46 = vector.broadcast %cst_20 : f32 to vector<8x128xf32>
    %47 = arith.subf %46, %45 : vector<8x128xf32>
    %48 = math.exp %47 : vector<8x128xf32>
    %cst_21 = arith.constant 1.000000e+00 : f32
    %49 = vector.broadcast %cst_21 : f32 to vector<8x128xf32>
    %50 = arith.addf %49, %48 : vector<8x128xf32>
    %51 = tpu.reciprocal %50 {approx = true} : vector<8x128xf32> -> vector<8x128xf32>
    %52 = arith.mulf %45, %51 : vector<8x128xf32>
    %c0_22 = arith.constant 0 : index
    %c0_23 = arith.constant 0 : index
    %53 = vector.load %arg3[%c0_22, %c0_23] : memref<8x128xf32, #tpu.memory_space<vmem>>, vector<8x128xf32>
    tpu.vector_store %arg3[%c0_22, %c0_23], %52 {strides = array<i32>} : memref<8x128xf32, #tpu.memory_space<vmem>>, vector<8x128xf32>,
    return
  }
}

</mosaic_0001>

<bundles_post_ra>
// kernel: feature_extractor_forward.1
= control target key start
LH: loop header
LB: loop body
LE: loop exit
PB: predicated region body
PF: predicated region fallthrough
CT: control target
= control target key end

     0   :  { %8 = vsyncpa [#allocation3], 0  ;;  %s3921_s0 = inlined_call_operand.vmem [shape: f32[8,768], index: 0, kind: input, shape index: {}]   ;;  %s3922_s1 = inlined_call_operand.hbm [shape: bf16[1280,512], index: 1, kind: input, shape index: {}]   ;;  %s3923_s2 = inlined_call_operand.hbm [shape: f32[8,512], index: 2, kind: input, shape index: {}]   ;;  %s3924_s3 = inlined_call_operand.vmem [shape: f32[8,128], index: 3, kind: output, shape index: {}]  }
   0x1   :  { %s16_s14 = sshll.u32 %s3922_s1, 4  ;;  %s17_s14 = int_to_ptr.hbm [resolvable:$true] %s16_s14 }
   0x2   :  { %9 = vsyncpa [#allocation5], 0  ;;  %s3808_s15 = smov [#allocation2]   ;;  %s30_s19 = sshll.u32 %s3923_s2, 4  ;;  %s31_s19 = int_to_ptr.hbm [resolvable:$true] %s30_s19 }
   0x3   :  { %s18_s16 = sshll.u32 %s3808_s15, 4  ;;  %s3809_s20 = smov 256   ;;  %s19_s16 = int_to_ptr.vmem [resolvable:$true] %s18_s16 }
   0x4   :  { %s3810_s21 = smov 16   ;;  %s3811_s22 = smov [#allocation4]  }
   0x5   :  { %24 = dma.hbm_to_vmem [thread:$0]  %s17_s14, 40960, %s19_s16, [#allocation3], %s3809_s20, %s3809_s20, %s3810_s21  }
   0x6   :  { %s32_s23 = sshll.u32 %s3811_s22, 4  ;;  %s33_s23 = int_to_ptr.vmem [resolvable:$true] %s32_s23 }
   0x7   :  { %35 = dma.hbm_to_vmem [thread:$0]  %s31_s19, 512, %s33_s23, [#allocation5]  }
   0x8   :  { %3804 = dma.done.wait [#allocation3], 40960  }
   0x9   :  { %3805 = vsyncadd [#allocation3], 4294926336 }
   0xa   :  { %3806 = dma.done.wait [#allocation5], 512  }
   0xb   :  { %3807 = vsyncadd [#allocation5], 4294966784  ;;  %v2434_v0 = vld [vmem:[#allocation2 + $0xe0] sm:$0xf]  ;;  %v3470_v1 = vld [vmem:[#allocation2 + $0xec] sm:$0xf0] }
   0xc   :  { %v2562_v2 = vld [vmem:[#allocation2 + $0x1e0] sm:$0xf]  ;;  %v2435_v3 = vor.u32 %v3470_v1, %v2434_v0  ;;  %v3502_v4 = vld [vmem:[#allocation2 + $0x1ec] sm:$0xf0] }
   0xd   :  { %v2690_v5 = vld [vmem:[#allocation2 + $0x2e0] sm:$0xf]  ;;  %v3534_v6 = vld [vmem:[#allocation2 + $0x2ec] sm:$0xf0]  ;;  %v2563_v7 = vor.u32 %v3502_v4, %v2562_v2 }
   0xe   :  { %v2691_v8 = vor.u32 %v3534_v6, %v2690_v5  ;;  %v2818_v9 = vld [vmem:[#allocation2 + $0x3e0] sm:$0xf]  ;;  %v3566_v10 = vld [vmem:[#allocation2 + $0x3ec] sm:$0xf0]  ;;  %1218 = vmatpush.bf16.msra.mxu0 %v2435_v3 }
   0xf   :  { %v2418_v11 = vld [vmem:[#allocation2 + $0xc0] sm:$0xf]  ;;  %v2819_v12 = vor.u32 %v3566_v10, %v2818_v9  ;;  %v3466_v13 = vld [vmem:[#allocation2 + $0xcc] sm:$0xf0]  ;;  %1231 = vmatpush.bf16.msra.mxu1 %v2563_v7 }
  0x10   :  { %v2546_v14 = vld [vmem:[#allocation2 + $0x1c0] sm:$0xf]  ;;  %v3498_v15 = vld [vmem:[#allocation2 + $0x1cc] sm:$0xf0]  ;;  %1244 = vmatpush.bf16.msra.mxu2 %v2691_v8  ;;  %v2419_v16 = vor.u32 %v3466_v13, %v2418_v11 }
  0x11   :  { %v2547_v17 = vor.u32 %v3498_v15, %v2546_v14  ;;  %v2674_v18 = vld [vmem:[#allocation2 + $0x2c0] sm:$0xf]  ;;  %v3530_v19 = vld [vmem:[#allocation2 + $0x2cc] sm:$0xf0]  ;;  %1257 = vmatpush.bf16.msra.mxu3 %v2819_v12 }
  0x12   :  { %v2802_v20 = vld [vmem:[#allocation2 + $0x3c0] sm:$0xf]  ;;  %v2675_v21 = vor.u32 %v3530_v19, %v2674_v18  ;;  %v3562_v22 = vld [vmem:[#allocation2 + $0x3cc] sm:$0xf0]  ;;  %1219 = vmatpush.bf16.msra.mxu0 %v2419_v16 }
  0x13   :  { %v2402_v23 = vld [vmem:[#allocation2 + $0xa0] sm:$0xf]  ;;  %v3462_v24 = vld [vmem:[#allocation2 + $0xac] sm:$0xf0]  ;;  %v2803_v25 = vor.u32 %v3562_v22, %v2802_v20  ;;  %1232 = vmatpush.bf16.msra.mxu1 %v2547_v17 }
  0x14   :  { %v2530_v26 = vld [vmem:[#allocation2 + $0x1a0] sm:$0xf]  ;;  %v3494_v27 = vld [vmem:[#allocation2 + $0x1ac] sm:$0xf0]  ;;  %v2403_v29 = vor.u32 %v3462_v24, %v2402_v23  ;;  %1245 = vmatpush.bf16.msra.mxu2 %v2675_v21 }
  0x15   :  { %v2658_v28 = vld [vmem:[#allocation2 + $0x2a0] sm:$0xf]  ;;  %v3526_v30 = vld [vmem:[#allocation2 + $0x2ac] sm:$0xf0]  ;;  %v2531_v33 = vor.u32 %v3494_v27, %v2530_v26  ;;  %1258 = vmatpush.bf16.msra.mxu3 %v2803_v25 }
  0x16   :  { %v2786_v31 = vld [vmem:[#allocation2 + $0x3a0] sm:$0xf]  ;;  %v3558_v32 = vld [vmem:[#allocation2 + $0x3ac] sm:$0xf0]  ;;  %v2659_v34 = vor.u32 %v3526_v30, %v2658_v28  ;;  %1220 = vmatpush.bf16.msra.mxu0 %v2403_v29 }
  0x17   :  { %v2386_v35 = vld [vmem:[#allocation2 + $0x80] sm:$0xf]  ;;  %v3458_v36 = vld [vmem:[#allocation2 + $0x8c] sm:$0xf0]  ;;  %v2787_v38 = vor.u32 %v3558_v32, %v2786_v31  ;;  %1233 = vmatpush.bf16.msra.mxu1 %v2531_v33  ;;  %v3468_v33 = vld [vmem:[#allocation2 + $0xe4] sm:$0xf] }
  0x18   :  { %v2514_v37 = vld [vmem:[#allocation2 + $0x180] sm:$0xf]  ;;  %v3490_v39 = vld [vmem:[#allocation2 + $0x18c] sm:$0xf0]  ;;  %v2387_v44 = vor.u32 %v3458_v36, %v2386_v35  ;;  %1246 = vmatpush.bf16.msra.mxu2 %v2659_v34  ;;  %v2436_v34 = vld [vmem:[#allocation2 + $0xf0] sm:$0xf0] }
  0x19   :  { %v2642_v40 = vld [vmem:[#allocation2 + $0x280] sm:$0xf]  ;;  %v3522_v41 = vld [vmem:[#allocation2 + $0x28c] sm:$0xf0]  ;;  %v2515_v45 = vor.u32 %v3490_v39, %v2514_v37  ;;  %1259 = vmatpush.bf16.msra.mxu3 %v2787_v38  ;;  %v3500_v37 = vld [vmem:[#allocation2 + $0x1e4] sm:$0xf] }
  0x1a   :  { %v2770_v42 = vld [vmem:[#allocation2 + $0x380] sm:$0xf]  ;;  %v3554_v43 = vld [vmem:[#allocation2 + $0x38c] sm:$0xf0]  ;;  %v2643_v46 = vor.u32 %v3522_v41, %v2642_v40  ;;  %1221 = vmatpush.bf16.msra.mxu0 %v2387_v44  ;;  %v2564_v38 = vld [vmem:[#allocation2 + $0x1f0] sm:$0xf0] }
  0x1b   :  { %v2370_v47 = vld [vmem:[#allocation2 + $0x60] sm:$0xf]  ;;  %v3454_v48 = vld [vmem:[#allocation2 + $0x6c] sm:$0xf0]  ;;  %v2771_v50 = vor.u32 %v3554_v43, %v2770_v42  ;;  %1234 = vmatpush.bf16.msra.mxu1 %v2515_v45  ;;  %v2439_v42 = vor.u32 %v3468_v33, %v2436_v34 }
  0x1c   :  { %v2498_v49 = vld [vmem:[#allocation2 + $0x160] sm:$0xf]  ;;  %v3486_v51 = vld [vmem:[#allocation2 + $0x16c] sm:$0xf0]  ;;  %v2371_v56 = vor.u32 %v3454_v48, %v2370_v47  ;;  %1247 = vmatpush.bf16.msra.mxu2 %v2643_v46  ;;  %v2567_v46 = vor.u32 %v3500_v37, %v2564_v38  ;;  %v3464_v48 = vld [vmem:[#allocation2 + $0xc4] sm:$0xf] }
  0x1d   :  { %v2626_v52 = vld [vmem:[#allocation2 + $0x260] sm:$0xf]  ;;  %v3518_v53 = vld [vmem:[#allocation2 + $0x26c] sm:$0xf0]  ;;  %v2499_v57 = vor.u32 %v3486_v51, %v2498_v49  ;;  %1260 = vmatpush.bf16.msra.mxu3 %v2771_v50  ;;  %v2420_v49 = vld [vmem:[#allocation2 + $0xd0] sm:$0xf0] }
  0x1e   :  { %v2754_v54 = vld [vmem:[#allocation2 + $0x360] sm:$0xf]  ;;  %v3550_v55 = vld [vmem:[#allocation2 + $0x36c] sm:$0xf0]  ;;  %v2627_v58 = vor.u32 %v3518_v53, %v2626_v52  ;;  %1222 = vmatpush.bf16.msra.mxu0 %v2371_v56  ;;  %v3496_v50 = vld [vmem:[#allocation2 + $0x1c4] sm:$0xf] }
  0x1f   :  { %v2354_v59 = vld [vmem:[#allocation2 + $0x40] sm:$0xf]  ;;  %v3450_v60 = vld [vmem:[#allocation2 + $0x4c] sm:$0xf0]  ;;  %v2755_v62 = vor.u32 %v3550_v55, %v2754_v54  ;;  %1235 = vmatpush.bf16.msra.mxu1 %v2499_v57  ;;  %v2548_v51 = vld [vmem:[#allocation2 + $0x1d0] sm:$0xf0]  ;;  %v2423_v57 = vor.u32 %v3464_v48, %v2420_v49 }
  0x20   :  { %v2482_v61 = vld [vmem:[#allocation2 + $0x140] sm:$0xf]  ;;  %v3482_v63 = vld [vmem:[#allocation2 + $0x14c] sm:$0xf0]  ;;  %v2355_v4 = vor.u32 %v3450_v60, %v2354_v59  ;;  %1248 = vmatpush.bf16.msra.mxu2 %v2627_v58 }
  0x21   :  { %v2610_v0 = vld [vmem:[#allocation2 + $0x240] sm:$0xf]  ;;  %v3514_v1 = vld [vmem:[#allocation2 + $0x24c] sm:$0xf0]  ;;  %v2483_v5 = vor.u32 %v3482_v63, %v2482_v61  ;;  %1261 = vmatpush.bf16.msra.mxu3 %v2755_v62  ;;  %v2551_v61 = vor.u32 %v3496_v50, %v2548_v51  ;;  %v3460_v62 = vld [vmem:[#allocation2 + $0xa4] sm:$0xf] }
  0x22   :  { %v2738_v2 = vld [vmem:[#allocation2 + $0x340] sm:$0xf]  ;;  %v3546_v3 = vld [vmem:[#allocation2 + $0x34c] sm:$0xf0]  ;;  %v2611_v6 = vor.u32 %v3514_v1, %v2610_v0  ;;  %1223 = vmatpush.bf16.msra.mxu0 %v2355_v4  ;;  %v2404_v63 = vld [vmem:[#allocation2 + $0xb0] sm:$0xf0] }
  0x23   :  { %v2338_v7 = vld [vmem:[#allocation2 + $0x20] sm:$0xf]  ;;  %v3446_v8 = vld [vmem:[#allocation2 + $0x2c] sm:$0xf0]  ;;  %v2739_v10 = vor.u32 %v3546_v3, %v2738_v2  ;;  %1236 = vmatpush.bf16.msra.mxu1 %v2483_v5  ;;  %v45_v0 = vld [vmem:[%s3921_s0 + $0x8] sm:$0xff] }
  0x24   :  { %v2466_v9 = vld [vmem:[#allocation2 + $0x120] sm:$0xf]  ;;  %v3478_v11 = vld [vmem:[#allocation2 + $0x12c] sm:$0xf0]  ;;  %v2339_v16 = vor.u32 %v3446_v8, %v2338_v7  ;;  %1249 = vmatpush.bf16.msra.mxu2 %v2611_v6  ;;  %v3492_v1 = vld [vmem:[#allocation2 + $0x1a4] sm:$0xf]  ;;  %v3847_v3 = vpack.c.bf16 %v45_v0, %v45_v0  ;;  %v2407_v8 = vor.u32 %v3460_v62, %v2404_v63 }
  0x25   :  { %v2594_v12 = vld [vmem:[#allocation2 + $0x220] sm:$0xf]  ;;  %v3510_v13 = vld [vmem:[#allocation2 + $0x22c] sm:$0xf0]  ;;  %v2467_v19 = vor.u32 %v3478_v11, %v2466_v9  ;;  %1262 = vmatpush.bf16.msra.mxu3 %v2739_v10  ;;  %v2532_v2 = vld [vmem:[#allocation2 + $0x1b0] sm:$0xf0] }
  0x26   :  { %v2722_v14 = vld [vmem:[#allocation2 + $0x320] sm:$0xf]  ;;  %v3542_v15 = vld [vmem:[#allocation2 + $0x32c] sm:$0xf0]  ;;  %v2595_v20 = vor.u32 %v3510_v13, %v2594_v12  ;;  %1224 = vmatpush.bf16.msra.mxu0 %v2339_v16  ;;  %v47_v11 = vld [vmem:[%s3921_s0 + $0x18] sm:$0xff]  ;;  %v2535_v12 = vor.u32 %v3492_v1, %v2532_v2 }
  0x27   :  { %v2322_v17 = vld [vmem:[#allocation2] sm:$0xf]  ;;  %v3442_v18 = vld [vmem:[#allocation2 + $0xc] sm:$0xf0]  ;;  %v2723_v24 = vor.u32 %v3542_v15, %v2722_v14  ;;  %1237 = vmatpush.bf16.msra.mxu1 %v2467_v19  ;;  %v3456_v14 = vld [vmem:[#allocation2 + $0x84] sm:$0xf]  ;;  %v3858_v19 = vpack.c.bf16 %v47_v11, %v47_v11 }
  0x28   :  { %v2450_v21 = vld [vmem:[#allocation2 + $0x100] sm:$0xf]  ;;  %v3474_v22 = vld [vmem:[#allocation2 + $0x10c] sm:$0xf0]  ;;  %v2323_v31 = vor.u32 %v3442_v18, %v2322_v17  ;;  %1250 = vmatpush.bf16.msra.mxu2 %v2595_v20  ;;  %v2388_v15 = vld [vmem:[#allocation2 + $0x90] sm:$0xf0] }
  0x29   :  { %v2578_v23 = vld [vmem:[#allocation2 + $0x200] sm:$0xf]  ;;  %v3506_v25 = vld [vmem:[#allocation2 + $0x20c] sm:$0xf0]  ;;  %v2451_v35 = vor.u32 %v3474_v22, %v2450_v21  ;;  %1263 = vmatpush.bf16.msra.mxu3 %v2723_v24  ;;  %v3488_v17 = vld [vmem:[#allocation2 + $0x184] sm:$0xf]  ;;  %v2391_v22 = vor.u32 %v3456_v14, %v2388_v15 }
  0x2a   :  { %v2706_v26 = vld [vmem:[#allocation2 + $0x300] sm:$0xf]  ;;  %v3538_v27 = vld [vmem:[#allocation2 + $0x30c] sm:$0xf0]  ;;  %v2579_v36 = vor.u32 %v3506_v25, %v2578_v23  ;;  %1225 = vmatpush.bf16.msra.mxu0 %v2323_v31  ;;  %v2516_v18 = vld [vmem:[#allocation2 + $0x190] sm:$0xf0] }
  0x2b   :  { %v2946_v28 = vld [vmem:[#allocation2 + $0x4e0] sm:$0xf]  ;;  %v3598_v29 = vld [vmem:[#allocation2 + $0x4ec] sm:$0xf0]  ;;  %v2707_v39 = vor.u32 %v3538_v27, %v2706_v26  ;;  %1238 = vmatpush.bf16.msra.mxu1 %v2451_v35  ;;  %v2519_v26 = vor.u32 %v3488_v17, %v2516_v18  ;;  %v2500_v31 = vld [vmem:[#allocation2 + $0x170] sm:$0xf0] }
  0x2c   :  { %v3074_v30 = vld [vmem:[#allocation2 + $0x5e0] sm:$0xf]  ;;  %v3630_v32 = vld [vmem:[#allocation2 + $0x5ec] sm:$0xf0]  ;;  %v2947_v40 = vor.u32 %v3598_v29, %v2946_v28  ;;  %1251 = vmatpush.bf16.msra.mxu2 %v2579_v36  ;;  %v3452_v28 = vld [vmem:[#allocation2 + $0x64] sm:$0xf] }
  0x2d   :  { %v3075_v41 = vor.u32 %v3630_v32, %v3074_v30  ;;  %v2930_v43 = vld [vmem:[#allocation2 + $0x4c0] sm:$0xf]  ;;  %v3594_v44 = vld [vmem:[#allocation2 + $0x4cc] sm:$0xf0]  ;;  %1264 = vmatpush.bf16.msra.mxu3 %v2707_v39  ;;  %v2372_v29 = vld [vmem:[#allocation2 + $0x70] sm:$0xf0] }
  0x2e   :  { %v3058_v45 = vld [vmem:[#allocation2 + $0x5c0] sm:$0xf]  ;;  %v3626_v47 = vld [vmem:[#allocation2 + $0x5cc] sm:$0xf0]  ;;  %1270 = vmatpush.bf16.msrb.mxu0 %v2947_v40  ;;  %v2931_v53 = vor.u32 %v3594_v44, %v2930_v43  ;;  %1239 = vmatmul.bf16.vlgmr.msra.gmra.mxu1 %v3847_v3  ;;  %v3484_v30 = vld [vmem:[#allocation2 + $0x164] sm:$0xf]  ;;  %v2375_v34 = vor.u32 %v3452_v28, %v2372_v29 }
  0x2f   :  { %v44_v52 = vld [vmem:[%s3921_s0] sm:$0xff]  ;;  %1283 = vmatpush.bf16.msrb.mxu1 %v3075_v41  ;;  %v3059_v56 = vor.u32 %v3626_v47, %v3058_v45  ;;  %v3590_v58 = vld [vmem:[#allocation2 + $0x4ac] sm:$0xf0]  ;;  %v2503_v38 = vor.u32 %v3484_v30, %v2500_v31  ;;  %v2356_v41 = vld [vmem:[#allocation2 + $0x50] sm:$0xf0] }
  0x30   :  { %v2914_v54 = vld [vmem:[#allocation2 + $0x4a0] sm:$0xf]  ;;  %v3841_v55 = vpack.c.bf16 %v44_v52, %v44_v52  ;;  %1296 = vmatpush.bf16.msrb.mxu2 %v2439_v42  ;;  %v3622_v60 = vld [vmem:[#allocation2 + $0x5ac] sm:$0xf0]  ;;  %1265 = vmatmul.bf16.vlgmr.msra.gmra.mxu3 %v3858_v19  ;;  %v3448_v40 = vld [vmem:[#allocation2 + $0x44] sm:$0xf] }
  0x31   :  { %v3042_v59 = vld [vmem:[#allocation2 + $0x5a0] sm:$0xf]  ;;  %1309 = vmatpush.bf16.msrb.mxu3 %v2567_v46  ;;  %v2915_v4 = vor.u32 %v3590_v58, %v2914_v54  ;;  %v3586_v6 = vld [vmem:[#allocation2 + $0x48c] sm:$0xf0]  ;;  %v3480_v42 = vld [vmem:[#allocation2 + $0x144] sm:$0xf]  ;;  %v2359_v46 = vor.u32 %v3448_v40, %v2356_v41 }
  0x32   :  { %1226 = vmatmul.bf16.vlgmr.msra.gmra.mxu0 %v3841_v55  ;;  %v2898_v5 = vld [vmem:[#allocation2 + $0x480] sm:$0xf]  ;;  %v3043_v7 = vor.u32 %v3622_v60, %v3042_v59  ;;  %v46_v10 = vld [vmem:[%s3921_s0 + $0x10] sm:$0xff]  ;;  %v3444_v52 = vld [vmem:[#allocation2 + $0x24] sm:$0xf] }
  0x33   :  { %1271 = vmatpush.bf16.msrb.mxu0 %v2931_v53  ;;  %1284 = vmatpush.bf16.msrb.mxu1 %v3059_v56  ;;  %v3026_v9 = vld [vmem:[#allocation2 + $0x580] sm:$0xf]  ;;  %v3618_v13 = vld [vmem:[#allocation2 + $0x58c] sm:$0xf0]  ;;  %v3856_v16 = vpack.c.bf16 %v46_v10, %v46_v10  ;;  %v2899_v20 = vor.u32 %v3586_v6, %v2898_v5  ;;  %v2484_v43 = vld [vmem:[#allocation2 + $0x150] sm:$0xf0] }
  0x34   :  { %1297 = vmatpush.bf16.msrb.mxu2 %v2423_v57  ;;  %v3027_v21 = vor.u32 %v3618_v13, %v3026_v9  ;;  %v2882_v23 = vld [vmem:[#allocation2 + $0x460] sm:$0xf]  ;;  %v3582_v24 = vld [vmem:[#allocation2 + $0x46c] sm:$0xf0]  ;;  %v2487_v50 = vor.u32 %v3480_v42, %v2484_v43  ;;  %v2340_v53 = vld [vmem:[#allocation2 + $0x30] sm:$0xf0] }
  0x35   :  { %1310 = vmatpush.bf16.msrb.mxu3 %v2551_v61  ;;  %1252 = vmatmul.bf16.vlgmr.msra.gmra.mxu2 %v3856_v16  ;;  %v3010_v25 = vld [vmem:[#allocation2 + $0x560] sm:$0xf]  ;;  %v3614_v27 = vld [vmem:[#allocation2 + $0x56c] sm:$0xf0]  ;;  %v2883_v32 = vor.u32 %v3582_v24, %v2882_v23  ;;  %v3476_v54 = vld [vmem:[#allocation2 + $0x124] sm:$0xf]  ;;  %v2343_v61 = vor.u32 %v3444_v52, %v2340_v53 }
  0x36   :  { %v3011_v33 = vor.u32 %v3614_v27, %v3010_v25  ;;  %v2866_v35 = vld [vmem:[#allocation2 + $0x440] sm:$0xf]  ;;  %v3578_v36 = vld [vmem:[#allocation2 + $0x44c] sm:$0xf0]  ;;  %v2468_v56 = vld [vmem:[#allocation2 + $0x130] sm:$0xf0] }
  0x37   :  { %1272 = vmatpush.bf16.msrb.mxu0 %v2915_v4  ;;  %1285 = vmatpush.bf16.msrb.mxu1 %v3043_v7  ;;  %v2994_v37 = vld [vmem:[#allocation2 + $0x540] sm:$0xf]  ;;  %v3610_v39 = vld [vmem:[#allocation2 + $0x54c] sm:$0xf0]  ;;  %v2867_v44 = vor.u32 %v3578_v36, %v2866_v35  ;;  %v3440_v0 = vld [vmem:[#allocation2 + $0x4] sm:$0xf]  ;;  %v2471_v1 = vor.u32 %v3476_v54, %v2468_v56 }
  0x38   :  { %1298 = vmatpush.bf16.msrb.mxu2 %v2407_v8  ;;  %v2995_v45 = vor.u32 %v3610_v39, %v2994_v37  ;;  %v2850_v47 = vld [vmem:[#allocation2 + $0x420] sm:$0xf]  ;;  %v3574_v48 = vld [vmem:[#allocation2 + $0x42c] sm:$0xf0]  ;;  %v2324_v2 = vld [vmem:[#allocation2 + $0x10] sm:$0xf0] }
  0x39   :  { %1311 = vmatpush.bf16.msrb.mxu3 %v2535_v12  ;;  %v2978_v49 = vld [vmem:[#allocation2 + $0x520] sm:$0xf]  ;;  %v3606_v51 = vld [vmem:[#allocation2 + $0x52c] sm:$0xf0]  ;;  %v2851_v57 = vor.u32 %v3574_v48, %v2850_v47  ;;  %v3472_v4 = vld [vmem:[#allocation2 + $0x104] sm:$0xf]  ;;  %v2327_v14 = vor.u32 %v3440_v0, %v2324_v2 }
  0x3a   :  { %v2834_v58 = vld [vmem:[#allocation2 + $0x400] sm:$0xf]  ;;  %v3570_v59 = vld [vmem:[#allocation2 + $0x40c] sm:$0xf0]  ;;  %v2979_v60 = vor.u32 %v3606_v51, %v2978_v49  ;;  %v2452_v5 = vld [vmem:[#allocation2 + $0x110] sm:$0xf0] }
  0x3b   :  { %1273 = vmatpush.bf16.msrb.mxu0 %v2899_v20  ;;  %1286 = vmatpush.bf16.msrb.mxu1 %v3027_v21  ;;  %v2962_v62 = vld [vmem:[#allocation2 + $0x500] sm:$0xf]  ;;  %v3602_v63 = vld [vmem:[#allocation2 + $0x50c] sm:$0xf0]  ;;  %v3532_v6 = vld [vmem:[#allocation2 + $0x2e4] sm:$0xf]  ;;  %v2835_v9 = vor.u32 %v3570_v59, %v2834_v58  ;;  %v2455_v20 = vor.u32 %v3472_v4, %v2452_v5 }
  0x3c   :  { %1299 = vmatpush.bf16.msrb.mxu2 %v2391_v22  ;;  %v2692_v7 = vld [vmem:[#allocation2 + $0x2f0] sm:$0xf0]  ;;  %v3564_v8 = vld [vmem:[#allocation2 + $0x3e4] sm:$0xf]  ;;  %v2963_v13 = vor.u32 %v3602_v63, %v2962_v62  ;;  %v49_v22 = vld [vmem:[%s3921_s0 + $0x28] sm:$0xff] }
  0x3d   :  { %1312 = vmatpush.bf16.msrb.mxu3 %v2519_v26  ;;  %v2820_v10 = vld [vmem:[#allocation2 + $0x3f0] sm:$0xf0]  ;;  %v3596_v11 = vld [vmem:[#allocation2 + $0x4e4] sm:$0xf]  ;;  %v2695_v21 = vor.u32 %v3532_v6, %v2692_v7 }
  0x3e   :  { %v2948_v12 = vld [vmem:[#allocation2 + $0x4f0] sm:$0xf0]  ;;  %v3628_v15 = vld [vmem:[#allocation2 + $0x5e4] sm:$0xf]  ;;  %v2823_v23 = vor.u32 %v3564_v8, %v2820_v10 }
  0x3f   :  { %1274 = vmatpush.bf16.msrb.mxu0 %v2883_v32  ;;  %1287 = vmatpush.bf16.msrb.mxu1 %v3011_v33  ;;  %v3076_v17 = vld [vmem:[#allocation2 + $0x5f0] sm:$0xf0]  ;;  %v48_v18 = vld [vmem:[%s3921_s0 + $0x20] sm:$0xff]  ;;  %v2951_v24 = vor.u32 %v3596_v11, %v2948_v12  ;;  %v3870_v33 = vpack.c.bf16 %v49_v22, %v49_v22 }
  0x40   :  { %1300 = vmatpush.bf16.msrb.mxu2 %v2375_v34  ;;  %v3528_v25 = vld [vmem:[#allocation2 + $0x2c4] sm:$0xf]  ;;  %v2676_v26 = vld [vmem:[#allocation2 + $0x2d0] sm:$0xf0]  ;;  %v3079_v28 = vor.u32 %v3628_v15, %v3076_v17  ;;  %v3868_v29 = vpack.c.bf16 %v48_v18, %v48_v18 }
  0x41   :  { %1313 = vmatpush.bf16.msrb.mxu3 %v2503_v38  ;;  %v3560_v27 = vld [vmem:[#allocation2 + $0x3c4] sm:$0xf]  ;;  %v2804_v30 = vld [vmem:[#allocation2 + $0x3d0] sm:$0xf0]  ;;  %v2679_v36 = vor.u32 %v3528_v25, %v2676_v26 }
  0x42   :  { %v3592_v31 = vld [vmem:[#allocation2 + $0x4c4] sm:$0xf]  ;;  %v2932_v32 = vld [vmem:[#allocation2 + $0x4d0] sm:$0xf0]  ;;  %v2807_v37 = vor.u32 %v3560_v27, %v2804_v30 }
  0x43   :  { %1275 = vmatpush.bf16.msrb.mxu0 %v2867_v44  ;;  %1288 = vmatpush.bf16.msrb.mxu1 %v2995_v45  ;;  %v3624_v34 = vld [vmem:[#allocation2 + $0x5c4] sm:$0xf]  ;;  %v3060_v35 = vld [vmem:[#allocation2 + $0x5d0] sm:$0xf0]  ;;  %v2935_v38 = vor.u32 %v3592_v31, %v2932_v32 }
  0x44   :  { %1301 = vmatpush.bf16.msrb.mxu2 %v2359_v46  ;;  %v3524_v39 = vld [vmem:[#allocation2 + $0x2a4] sm:$0xf]  ;;  %v2660_v40 = vld [vmem:[#allocation2 + $0x2b0] sm:$0xf0]  ;;  %v3063_v42 = vor.u32 %v3624_v34, %v3060_v35 }
  0x45   :  { %1314 = vmatpush.bf16.msrb.mxu3 %v2487_v50  ;;  %v3556_v41 = vld [vmem:[#allocation2 + $0x3a4] sm:$0xf]  ;;  %v2788_v43 = vld [vmem:[#allocation2 + $0x3b0] sm:$0xf0]  ;;  %v2663_v48 = vor.u32 %v3524_v39, %v2660_v40 }
  0x46   :  { %v3588_v44 = vld [vmem:[#allocation2 + $0x4a4] sm:$0xf]  ;;  %v2916_v45 = vld [vmem:[#allocation2 + $0x4b0] sm:$0xf0]  ;;  %v2791_v49 = vor.u32 %v3556_v41, %v2788_v43 }
  0x47   :  { %1276 = vmatpush.bf16.msrb.mxu0 %v2851_v57  ;;  %1289 = vmatpush.bf16.msrb.mxu1 %v2979_v60  ;;  %v3620_v46 = vld [vmem:[#allocation2 + $0x5a4] sm:$0xf]  ;;  %v3044_v47 = vld [vmem:[#allocation2 + $0x5b0] sm:$0xf0]  ;;  %v2919_v50 = vor.u32 %v3588_v44, %v2916_v45 }
  0x48   :  { %1302 = vmatpush.bf16.msrb.mxu2 %v2343_v61  ;;  %v3520_v51 = vld [vmem:[#allocation2 + $0x284] sm:$0xf]  ;;  %v2644_v52 = vld [vmem:[#allocation2 + $0x290] sm:$0xf0]  ;;  %v3047_v54 = vor.u32 %v3620_v46, %v3044_v47 }
  0x49   :  { %1315 = vmatpush.bf16.msrb.mxu3 %v2471_v1  ;;  %v3552_v53 = vld [vmem:[#allocation2 + $0x384] sm:$0xf]  ;;  %v2772_v56 = vld [vmem:[#allocation2 + $0x390] sm:$0xf0]  ;;  %v2647_v61 = vor.u32 %v3520_v51, %v2644_v52  ;;  %v3471_v51 = vld [vmem:[#allocation2 + $0xf4] sm:$0xf0] }
  0x4a   :  { %v3584_v57 = vld [vmem:[#allocation2 + $0x484] sm:$0xf]  ;;  %v2900_v58 = vld [vmem:[#allocation2 + $0x490] sm:$0xf0]  ;;  %v2775_v62 = vor.u32 %v3552_v53, %v2772_v56  ;;  %v2570_v52 = vld [vmem:[#allocation2 + $0x1e8] sm:$0xf] }
  0x4b   :  { %1277 = vmatpush.bf16.msrb.mxu0 %v2835_v9  ;;  %1290 = vmatpush.bf16.msrb.mxu1 %v2963_v13  ;;  %v3616_v59 = vld [vmem:[#allocation2 + $0x584] sm:$0xf]  ;;  %v3028_v60 = vld [vmem:[#allocation2 + $0x590] sm:$0xf0]  ;;  %v2903_v63 = vor.u32 %v3584_v57, %v2900_v58  ;;  %v2698_v56 = vld [vmem:[#allocation2 + $0x2e8] sm:$0xf] }
  0x4c   :  { %1303 = vmatpush.bf16.msrb.mxu2 %v2327_v14  ;;  %v3516_v0 = vld [vmem:[#allocation2 + $0x264] sm:$0xf]  ;;  %v2628_v1 = vld [vmem:[#allocation2 + $0x270] sm:$0xf0]  ;;  %v3031_v4 = vor.u32 %v3616_v59, %v3028_v60  ;;  %v3535_v57 = vld [vmem:[#allocation2 + $0x2f4] sm:$0xf0] }
  0x4d   :  { %1316 = vmatpush.bf16.msrb.mxu3 %v2455_v20  ;;  %v3548_v2 = vld [vmem:[#allocation2 + $0x364] sm:$0xf]  ;;  %v2756_v5 = vld [vmem:[#allocation2 + $0x370] sm:$0xf0]  ;;  %v2631_v10 = vor.u32 %v3516_v0, %v2628_v1  ;;  %v2826_v60 = vld [vmem:[#allocation2 + $0x3e8] sm:$0xf]  ;;  %v2699_v1 = vor.u32 %v3535_v57, %v2698_v56 }
  0x4e   :  { %1278 = vmatmul.bf16.vlgmr.msrb.gmra.mxu0 %v3868_v29  ;;  %1291 = vmatmul.bf16.vlgmr.msrb.gmra.mxu1 %v3870_v33  ;;  %v3580_v6 = vld [vmem:[#allocation2 + $0x464] sm:$0xf]  ;;  %v2884_v7 = vld [vmem:[#allocation2 + $0x470] sm:$0xf0]  ;;  %v2759_v11 = vor.u32 %v3548_v2, %v2756_v5  ;;  %v2426_v2 = vld [vmem:[#allocation2 + $0xc8] sm:$0xf] }
  0x4f   :  { %1322 = vmatpush.bf16.msra.mxu0 %v2695_v21  ;;  %1335 = vmatpush.bf16.msra.mxu1 %v2823_v23  ;;  %v3612_v8 = vld [vmem:[#allocation2 + $0x564] sm:$0xf]  ;;  %v3012_v9 = vld [vmem:[#allocation2 + $0x570] sm:$0xf0]  ;;  %v2887_v12 = vor.u32 %v3580_v6, %v2884_v7  ;;  %v2554_v5 = vld [vmem:[#allocation2 + $0x1c8] sm:$0xf] }
  0x50   :  { %1348 = vmatpush.bf16.msra.mxu2 %v2951_v24  ;;  %1317 = vmatmul.bf16.vlgmr.msrb.gmra.mxu3 %v3847_v3  ;;  %v3512_v13 = vld [vmem:[#allocation2 + $0x244] sm:$0xf]  ;;  %v2612_v14 = vld [vmem:[#allocation2 + $0x250] sm:$0xf0]  ;;  %v3015_v17 = vor.u32 %v3612_v8, %v3012_v9  ;;  %v3499_v7 = vld [vmem:[#allocation2 + $0x1d4] sm:$0xf0] }
  0x51   :  { %1361 = vmatpush.bf16.msra.mxu3 %v3079_v28  ;;  %1304 = vmatmul.bf16.vlgmr.msrb.gmra.mxu2 %v3841_v55  ;;  %v3544_v15 = vld [vmem:[#allocation2 + $0x344] sm:$0xf]  ;;  %v2740_v18 = vld [vmem:[#allocation2 + $0x350] sm:$0xf0]  ;;  %v2615_v24 = vor.u32 %v3512_v13, %v2612_v14  ;;  %v2682_v8 = vld [vmem:[#allocation2 + $0x2c8] sm:$0xf]  ;;  %v2555_v13 = vor.u32 %v3499_v7, %v2554_v5 }
  0x52   :  { %v3576_v20 = vld [vmem:[#allocation2 + $0x444] sm:$0xf]  ;;  %v2868_v21 = vld [vmem:[#allocation2 + $0x450] sm:$0xf0]  ;;  %v2743_v25 = vor.u32 %v3544_v15, %v2740_v18  ;;  %v3531_v9 = vld [vmem:[#allocation2 + $0x2d4] sm:$0xf0] }
  0x53   :  { %1323 = vmatpush.bf16.msra.mxu0 %v2679_v36  ;;  %1336 = vmatpush.bf16.msra.mxu1 %v2807_v37  ;;  %v3608_v22 = vld [vmem:[#allocation2 + $0x544] sm:$0xf]  ;;  %v2996_v23 = vld [vmem:[#allocation2 + $0x550] sm:$0xf0]  ;;  %v2871_v26 = vor.u32 %v3576_v20, %v2868_v21  ;;  %v2683_v14 = vor.u32 %v3531_v9, %v2682_v8  ;;  %v2410_v15 = vld [vmem:[#allocation2 + $0xa8] sm:$0xf] }
  0x54   :  { %1349 = vmatpush.bf16.msra.mxu2 %v2935_v38  ;;  %v3508_v27 = vld [vmem:[#allocation2 + $0x224] sm:$0xf]  ;;  %v2596_v28 = vld [vmem:[#allocation2 + $0x230] sm:$0xf0]  ;;  %v2999_v31 = vor.u32 %v3608_v22, %v2996_v23  ;;  %v2538_v18 = vld [vmem:[#allocation2 + $0x1a8] sm:$0xf] }
  0x55   :  { %1362 = vmatpush.bf16.msra.mxu3 %v3063_v42  ;;  %v3540_v30 = vld [vmem:[#allocation2 + $0x324] sm:$0xf]  ;;  %v2724_v32 = vld [vmem:[#allocation2 + $0x330] sm:$0xf0]  ;;  %v2599_v38 = vor.u32 %v3508_v27, %v2596_v28  ;;  %v3495_v21 = vld [vmem:[#allocation2 + $0x1b4] sm:$0xf0] }
  0x56   :  { %v3572_v34 = vld [vmem:[#allocation2 + $0x424] sm:$0xf]  ;;  %v2852_v35 = vld [vmem:[#allocation2 + $0x430] sm:$0xf0]  ;;  %v2727_v41 = vor.u32 %v3540_v30, %v2724_v32  ;;  %v2666_v22 = vld [vmem:[#allocation2 + $0x2a8] sm:$0xf]  ;;  %v2539_v27 = vor.u32 %v3495_v21, %v2538_v18 }
  0x57   :  { %1324 = vmatpush.bf16.msra.mxu0 %v2663_v48  ;;  %1337 = vmatpush.bf16.msra.mxu1 %v2791_v49  ;;  %v3604_v36 = vld [vmem:[#allocation2 + $0x524] sm:$0xf]  ;;  %v2980_v37 = vld [vmem:[#allocation2 + $0x530] sm:$0xf0]  ;;  %v2855_v42 = vor.u32 %v3572_v34, %v2852_v35  ;;  %v3527_v23 = vld [vmem:[#allocation2 + $0x2b4] sm:$0xf0] }
  0x58   :  { %1350 = vmatpush.bf16.msra.mxu2 %v2919_v50  ;;  %v3504_v39 = vld [vmem:[#allocation2 + $0x204] sm:$0xf]  ;;  %v2580_v40 = vld [vmem:[#allocation2 + $0x210] sm:$0xf0]  ;;  %v2983_v46 = vor.u32 %v3604_v36, %v2980_v37  ;;  %v2442_v50 = vld [vmem:[#allocation2 + $0xe8] sm:$0xf]  ;;  %v2667_v28 = vor.u32 %v3527_v23, %v2666_v22 }
  0x59   :  { %1363 = vmatpush.bf16.msra.mxu3 %v3047_v54  ;;  %v3536_v43 = vld [vmem:[#allocation2 + $0x304] sm:$0xf]  ;;  %v2708_v44 = vld [vmem:[#allocation2 + $0x310] sm:$0xf0]  ;;  %v2583_v53 = vor.u32 %v3504_v39, %v2580_v40  ;;  %v3503_v54 = vld [vmem:[#allocation2 + $0x1f4] sm:$0xf0] }
  0x5a   :  { %v3568_v45 = vld [vmem:[#allocation2 + $0x404] sm:$0xf]  ;;  %v2836_v47 = vld [vmem:[#allocation2 + $0x410] sm:$0xf0]  ;;  %v2711_v58 = vor.u32 %v3536_v43, %v2708_v44  ;;  %v2571_v0 = vor.u32 %v3503_v54, %v2570_v52  ;;  %v2394_v30 = vld [vmem:[#allocation2 + $0x88] sm:$0xf] }
  0x5b   :  { %1325 = vmatpush.bf16.msra.mxu0 %v2647_v61  ;;  %1338 = vmatpush.bf16.msra.mxu1 %v2775_v62  ;;  %v3600_v48 = vld [vmem:[#allocation2 + $0x504] sm:$0xf]  ;;  %v2964_v49 = vld [vmem:[#allocation2 + $0x510] sm:$0xf0]  ;;  %v2839_v59 = vor.u32 %v3568_v45, %v2836_v47  ;;  %v3567_v61 = vld [vmem:[#allocation2 + $0x3f4] sm:$0xf0] }
  0x5c   :  { %1351 = vmatpush.bf16.msra.mxu2 %v2903_v63  ;;  %v2967_v62 = vor.u32 %v3600_v48, %v2964_v49  ;;  %v2443_v63 = vor.u32 %v3471_v51, %v2442_v50  ;;  %v2827_v6 = vor.u32 %v3567_v61, %v2826_v60  ;;  %v2522_v32 = vld [vmem:[#allocation2 + $0x188] sm:$0xf]  ;;  %v3491_v35 = vld [vmem:[#allocation2 + $0x194] sm:$0xf0] }
  0x5d   :  { %1364 = vmatpush.bf16.msra.mxu3 %v3031_v4  ;;  %v3467_v4 = vld [vmem:[#allocation2 + $0xd4] sm:$0xf0]  ;;  %v2650_v36 = vld [vmem:[#allocation2 + $0x288] sm:$0xf] }
  0x5e   :  { %v3523_v37 = vld [vmem:[#allocation2 + $0x294] sm:$0xf0]  ;;  %v2378_v43 = vld [vmem:[#allocation2 + $0x68] sm:$0xf] }
  0x5f   :  { %1326 = vmatpush.bf16.msra.mxu0 %v2631_v10  ;;  %1339 = vmatpush.bf16.msra.mxu1 %v2759_v11  ;;  %v2810_v10 = vld [vmem:[#allocation2 + $0x3c8] sm:$0xf]  ;;  %v3563_v11 = vld [vmem:[#allocation2 + $0x3d4] sm:$0xf0] }
  0x60   :  { %1352 = vmatpush.bf16.msra.mxu2 %v2887_v12  ;;  %v2427_v12 = vor.u32 %v3467_v4, %v2426_v2  ;;  %v2811_v20 = vor.u32 %v3563_v11, %v2810_v10  ;;  %v3555_v39 = vld [vmem:[#allocation2 + $0x394] sm:$0xf0]  ;;  %v2506_v45 = vld [vmem:[#allocation2 + $0x168] sm:$0xf] }
  0x61   :  { %1365 = vmatpush.bf16.msra.mxu3 %v3015_v17  ;;  %v3463_v17 = vld [vmem:[#allocation2 + $0xb4] sm:$0xf0]  ;;  %v2634_v48 = vld [vmem:[#allocation2 + $0x268] sm:$0xf] }
  0x62   :  { %v3455_v44 = vld [vmem:[#allocation2 + $0x74] sm:$0xf0]  ;;  %v2762_v50 = vld [vmem:[#allocation2 + $0x368] sm:$0xf] }
  0x63   :  { %1327 = vmatpush.bf16.msra.mxu0 %v2615_v24  ;;  %1340 = vmatpush.bf16.msra.mxu1 %v2743_v25  ;;  %v2794_v24 = vld [vmem:[#allocation2 + $0x3a8] sm:$0xf]  ;;  %v3559_v25 = vld [vmem:[#allocation2 + $0x3b4] sm:$0xf0]  ;;  %v2379_v52 = vor.u32 %v3455_v44, %v2378_v43 }
  0x64   :  { %1353 = vmatpush.bf16.msra.mxu2 %v2871_v26  ;;  %v2411_v26 = vor.u32 %v3463_v17, %v2410_v15  ;;  %v2795_v34 = vor.u32 %v3559_v25, %v2794_v24  ;;  %v3487_v47 = vld [vmem:[#allocation2 + $0x174] sm:$0xf0]  ;;  %v2362_v56 = vld [vmem:[#allocation2 + $0x48] sm:$0xf] }
  0x65   :  { %1366 = vmatpush.bf16.msra.mxu3 %v2999_v31  ;;  %v3459_v31 = vld [vmem:[#allocation2 + $0x94] sm:$0xf0]  ;;  %v2618_v61 = vld [vmem:[#allocation2 + $0x248] sm:$0xf] }
  0x66   :  { %v2395_v40 = vor.u32 %v3459_v31, %v2394_v30  ;;  %v3519_v49 = vld [vmem:[#allocation2 + $0x274] sm:$0xf0]  ;;  %v2346_v5 = vld [vmem:[#allocation2 + $0x28] sm:$0xf] }
  0x67   :  { %1328 = vmatpush.bf16.msra.mxu0 %v2599_v38  ;;  %1341 = vmatpush.bf16.msra.mxu1 %v2727_v41  ;;  %v2778_v38 = vld [vmem:[#allocation2 + $0x388] sm:$0xf]  ;;  %v2523_v41 = vor.u32 %v3491_v35, %v2522_v32  ;;  %v3551_v51 = vld [vmem:[#allocation2 + $0x374] sm:$0xf0]  ;;  %v2635_v54 = vor.u32 %v3519_v49, %v2634_v48  ;;  %v3469_v35 = vld [vmem:[#allocation2 + $0xec] sm:$0xf] }
  0x68   :  { %1354 = vmatpush.bf16.msra.mxu2 %v2855_v42  ;;  %v2651_v42 = vor.u32 %v3523_v37, %v2650_v36  ;;  %v3451_v57 = vld [vmem:[#allocation2 + $0x54] sm:$0xf0]  ;;  %v2474_v7 = vld [vmem:[#allocation2 + $0x128] sm:$0xf]  ;;  %v2444_v36 = vld [vmem:[#allocation2 + $0xf8] sm:$0xf0] }
  0x69   :  { %1367 = vmatpush.bf16.msra.mxu3 %v2983_v46  ;;  %v2779_v46 = vor.u32 %v3555_v39, %v2778_v38  ;;  %v3483_v60 = vld [vmem:[#allocation2 + $0x154] sm:$0xf0]  ;;  %v2602_v10 = vld [vmem:[#allocation2 + $0x228] sm:$0xf]  ;;  %v3501_v39 = vld [vmem:[#allocation2 + $0x1ec] sm:$0xf]  ;;  %v2447_v44 = vor.u32 %v3469_v35, %v2444_v36 }
  0x6a   :  { %v3479_v9 = vld [vmem:[#allocation2 + $0x134] sm:$0xf0]  ;;  %v2330_v15 = vld [vmem:[#allocation2 + $0x8] sm:$0xf] }
  0x6b   :  { %1329 = vmatpush.bf16.msra.mxu0 %v2583_v53  ;;  %1342 = vmatpush.bf16.msra.mxu1 %v2711_v58  ;;  %v2507_v53 = vor.u32 %v3487_v47, %v2506_v45  ;;  %v2490_v58 = vld [vmem:[#allocation2 + $0x148] sm:$0xf]  ;;  %v3511_v11 = vld [vmem:[#allocation2 + $0x234] sm:$0xf0]  ;;  %v2475_v18 = vor.u32 %v3479_v9, %v2474_v7 }
  0x6c   :  { %1355 = vmatpush.bf16.msra.mxu2 %v2839_v59  ;;  %v2763_v59 = vor.u32 %v3551_v51, %v2762_v50  ;;  %v2491_v2 = vor.u32 %v3483_v60, %v2490_v58  ;;  %v3443_v17 = vld [vmem:[#allocation2 + $0x14] sm:$0xf0]  ;;  %v2458_v21 = vld [vmem:[#allocation2 + $0x108] sm:$0xf]  ;;  %v3465_v50 = vld [vmem:[#allocation2 + $0xcc] sm:$0xf] }
  0x6d   :  { %1368 = vmatpush.bf16.msra.mxu3 %v2967_v62  ;;  %v3515_v62 = vld [vmem:[#allocation2 + $0x254] sm:$0xf0]  ;;  %v2586_v23 = vld [vmem:[#allocation2 + $0x208] sm:$0xf]  ;;  %v2331_v32 = vor.u32 %v3443_v17, %v2330_v15  ;;  %v2428_v51 = vld [vmem:[#allocation2 + $0xd8] sm:$0xf0] }
  0x6e   :  { %1330 = vmatmul.bf16.vlgmr.msra.gmra.mxu0 %v3856_v16  ;;  %1343 = vmatmul.bf16.vlgmr.msra.gmra.mxu1 %v3858_v19  ;;  %v2619_v4 = vor.u32 %v3515_v62, %v2618_v61  ;;  %v3475_v22 = vld [vmem:[#allocation2 + $0x114] sm:$0xf0]  ;;  %v3082_v31 = vld [vmem:[#allocation2 + $0x5e8] sm:$0xf]  ;;  %v2524_v15 = vld [vmem:[#allocation2 + $0x198] sm:$0xf0] }
  0x6f   :  { %1374 = vmatpush.bf16.msrb.mxu0 %v2443_v63  ;;  %1387 = vmatpush.bf16.msrb.mxu1 %v2571_v0  ;;  %v2746_v63 = vld [vmem:[#allocation2 + $0x348] sm:$0xf]  ;;  %v3547_v0 = vld [vmem:[#allocation2 + $0x354] sm:$0xf0]  ;;  %v2459_v37 = vor.u32 %v3475_v22, %v2458_v21 }
  0x70   :  { %1400 = vmatpush.bf16.msrb.mxu2 %v2699_v1  ;;  %1369 = vmatmul.bf16.vlgmr.msra.gmra.mxu3 %v3870_v33  ;;  %v2363_v1 = vor.u32 %v3451_v57, %v2362_v56  ;;  %v2747_v8 = vor.u32 %v3547_v0, %v2746_v63  ;;  %v3507_v25 = vld [vmem:[#allocation2 + $0x214] sm:$0xf0]  ;;  %v2938_v45 = vld [vmem:[#allocation2 + $0x4c8] sm:$0xf]  ;;  %v2431_v57 = vor.u32 %v3465_v50, %v2428_v51  ;;  %v3461_v63 = vld [vmem:[#allocation2 + $0xac] sm:$0xf] }
  0x71   :  { %1413 = vmatpush.bf16.msrb.mxu3 %v2827_v6  ;;  %1356 = vmatmul.bf16.vlgmr.msra.gmra.mxu2 %v3868_v29  ;;  %v3447_v6 = vld [vmem:[#allocation2 + $0x34] sm:$0xf0]  ;;  %v2587_v38 = vor.u32 %v3507_v25, %v2586_v23  ;;  %v3066_v47 = vld [vmem:[#allocation2 + $0x5c8] sm:$0xf]  ;;  %v2412_v0 = vld [vmem:[#allocation2 + $0xb8] sm:$0xf0] }
  0x72   :  { %v3599_v30 = vld [vmem:[#allocation2 + $0x4f4] sm:$0xf0]  ;;  %v2922_v58 = vld [vmem:[#allocation2 + $0x4a8] sm:$0xf] }
  0x73   :  { %1375 = vmatpush.bf16.msrb.mxu0 %v2427_v12  ;;  %1388 = vmatpush.bf16.msrb.mxu1 %v2555_v13  ;;  %v2730_v12 = vld [vmem:[#allocation2 + $0x328] sm:$0xf]  ;;  %v3543_v13 = vld [vmem:[#allocation2 + $0x334] sm:$0xf0] }
  0x74   :  { %1401 = vmatpush.bf16.msrb.mxu2 %v2683_v14  ;;  %v2347_v14 = vor.u32 %v3447_v6, %v2346_v5  ;;  %v2731_v24 = vor.u32 %v3543_v13, %v2730_v12  ;;  %v3627_v49 = vld [vmem:[#allocation2 + $0x5d4] sm:$0xf0]  ;;  %v3050_v60 = vld [vmem:[#allocation2 + $0x5a8] sm:$0xf]  ;;  %v2415_v6 = vor.u32 %v3461_v63, %v2412_v0  ;;  %v3457_v12 = vld [vmem:[#allocation2 + $0x8c] sm:$0xf] }
  0x75   :  { %1414 = vmatpush.bf16.msrb.mxu3 %v2811_v20  ;;  %v2603_v20 = vor.u32 %v3511_v11, %v2602_v10  ;;  %v3067_v56 = vor.u32 %v3627_v49, %v3066_v47  ;;  %v3623_v62 = vld [vmem:[#allocation2 + $0x5b4] sm:$0xf0]  ;;  %v2906_v7 = vld [vmem:[#allocation2 + $0x488] sm:$0xf]  ;;  %v2396_v13 = vld [vmem:[#allocation2 + $0x98] sm:$0xf0] }
  0x76   :  { %v3051_v5 = vor.u32 %v3623_v62, %v3050_v60  ;;  %v3034_v9 = vld [vmem:[#allocation2 + $0x588] sm:$0xf]  ;;  %v3619_v11 = vld [vmem:[#allocation2 + $0x594] sm:$0xf0]  ;;  %v3441_v0 = vld [vmem:[#allocation2 + $0xc] sm:$0xf] }
  0x77   :  { %1376 = vmatpush.bf16.msrb.mxu0 %v2411_v26  ;;  %1389 = vmatpush.bf16.msrb.mxu1 %v2539_v27  ;;  %v2714_v26 = vld [vmem:[#allocation2 + $0x308] sm:$0xf]  ;;  %v3539_v27 = vld [vmem:[#allocation2 + $0x314] sm:$0xf0] }
  0x78   :  { %1402 = vmatpush.bf16.msrb.mxu2 %v2667_v28  ;;  %v2954_v28 = vld [vmem:[#allocation2 + $0x4e8] sm:$0xf]  ;;  %v3583_v22 = vld [vmem:[#allocation2 + $0x474] sm:$0xf0] }
  0x79   :  { %1415 = vmatpush.bf16.msrb.mxu3 %v2795_v34  ;;  %v3631_v34 = vld [vmem:[#allocation2 + $0x5f4] sm:$0xf0]  ;;  %v2890_v21 = vld [vmem:[#allocation2 + $0x468] sm:$0xf] }
  0x7a   :  { %v3083_v43 = vor.u32 %v3631_v34, %v3082_v31  ;;  %v3018_v23 = vld [vmem:[#allocation2 + $0x568] sm:$0xf]  ;;  %v3615_v25 = vld [vmem:[#allocation2 + $0x574] sm:$0xf0]  ;;  %v2891_v31 = vor.u32 %v3583_v22, %v2890_v21 }
  0x7b   :  { %1377 = vmatpush.bf16.msrb.mxu0 %v2395_v40  ;;  %1390 = vmatpush.bf16.msrb.mxu1 %v2523_v41  ;;  %v2572_v40 = vld [vmem:[#allocation2 + $0x1f8] sm:$0xf0]  ;;  %v2715_v41 = vor.u32 %v3539_v27, %v2714_v26  ;;  %v3453_v26 = vld [vmem:[#allocation2 + $0x6c] sm:$0xf]  ;;  %v2874_v35 = vld [vmem:[#allocation2 + $0x448] sm:$0xf] }
  0x7c   :  { %1403 = vmatpush.bf16.msrb.mxu2 %v2651_v42  ;;  %v2955_v42 = vor.u32 %v3599_v30, %v2954_v28  ;;  %v2575_v48 = vor.u32 %v3501_v39, %v2572_v40  ;;  %v2380_v27 = vld [vmem:[#allocation2 + $0x78] sm:$0xf0]  ;;  %v3485_v28 = vld [vmem:[#allocation2 + $0x16c] sm:$0xf]  ;;  %v3579_v36 = vld [vmem:[#allocation2 + $0x454] sm:$0xf0] }
  0x7d   :  { %1416 = vmatpush.bf16.msrb.mxu3 %v2779_v46  ;;  %v3595_v46 = vld [vmem:[#allocation2 + $0x4d4] sm:$0xf0]  ;;  %v2508_v30 = vld [vmem:[#allocation2 + $0x178] sm:$0xf0]  ;;  %v2383_v34 = vor.u32 %v3453_v26, %v2380_v27  ;;  %v3449_v40 = vld [vmem:[#allocation2 + $0x4c] sm:$0xf] }
  0x7e   :  { %v3611_v39 = vld [vmem:[#allocation2 + $0x554] sm:$0xf0]  ;;  %v2858_v47 = vld [vmem:[#allocation2 + $0x428] sm:$0xf]  ;;  %v2812_v27 = vld [vmem:[#allocation2 + $0x3d8] sm:$0xf0] }
  0x7f   :  { %1378 = vmatpush.bf16.msrb.mxu0 %v2379_v52  ;;  %1391 = vmatpush.bf16.msrb.mxu1 %v2507_v53  ;;  %v3497_v52 = vld [vmem:[#allocation2 + $0x1cc] sm:$0xf]  ;;  %v2556_v53 = vld [vmem:[#allocation2 + $0x1d8] sm:$0xf0]  ;;  %v2986_v49 = vld [vmem:[#allocation2 + $0x528] sm:$0xf] }
  0x80   :  { %1404 = vmatpush.bf16.msrb.mxu2 %v2635_v54  ;;  %v2939_v54 = vor.u32 %v3595_v46, %v2938_v45  ;;  %v2559_v61 = vor.u32 %v3497_v52, %v2556_v53  ;;  %v3607_v51 = vld [vmem:[#allocation2 + $0x534] sm:$0xf0]  ;;  %v3445_v52 = vld [vmem:[#allocation2 + $0x2c] sm:$0xf]  ;;  %v2348_v53 = vld [vmem:[#allocation2 + $0x38] sm:$0xf0] }
  0x81   :  { %1417 = vmatpush.bf16.msrb.mxu3 %v2763_v59  ;;  %v3591_v59 = vld [vmem:[#allocation2 + $0x4b4] sm:$0xf0]  ;;  %v2987_v60 = vor.u32 %v3607_v51, %v2986_v49  ;;  %v2970_v62 = vld [vmem:[#allocation2 + $0x508] sm:$0xf]  ;;  %v3521_v49 = vld [vmem:[#allocation2 + $0x28c] sm:$0xf] }
  0x82   :  { %v3603_v63 = vld [vmem:[#allocation2 + $0x514] sm:$0xf0]  ;;  %v3553_v51 = vld [vmem:[#allocation2 + $0x38c] sm:$0xf] }
  0x83   :  { %1379 = vmatpush.bf16.msrb.mxu0 %v2363_v1  ;;  %1392 = vmatpush.bf16.msrb.mxu1 %v2491_v2  ;;  %v3493_v1 = vld [vmem:[#allocation2 + $0x1ac] sm:$0xf]  ;;  %v2540_v2 = vld [vmem:[#allocation2 + $0x1b8] sm:$0xf0] }
  0x84   :  { %1405 = vmatpush.bf16.msrb.mxu2 %v2619_v4  ;;  %v2923_v4 = vor.u32 %v3591_v59, %v2922_v58  ;;  %v2543_v10 = vor.u32 %v3493_v1, %v2540_v2  ;;  %v2842_v58 = vld [vmem:[#allocation2 + $0x408] sm:$0xf]  ;;  %v3571_v59 = vld [vmem:[#allocation2 + $0x414] sm:$0xf0]  ;;  %v2332_v2 = vld [vmem:[#allocation2 + $0x18] sm:$0xf0] }
  0x85   :  { %1418 = vmatpush.bf16.msrb.mxu3 %v2747_v8  ;;  %v3587_v8 = vld [vmem:[#allocation2 + $0x494] sm:$0xf0] }
  0x86   :  { %v2907_v17 = vor.u32 %v3587_v8, %v2906_v7  ;;  %v2700_v7 = vld [vmem:[#allocation2 + $0x2f8] sm:$0xf0]  ;;  %v3565_v8 = vld [vmem:[#allocation2 + $0x3ec] sm:$0xf] }
  0x87   :  { %1380 = vmatpush.bf16.msrb.mxu0 %v2347_v14  ;;  %1393 = vmatpush.bf16.msrb.mxu1 %v2475_v18  ;;  %v3489_v14 = vld [vmem:[#allocation2 + $0x18c] sm:$0xf]  ;;  %v3035_v18 = vor.u32 %v3619_v11, %v3034_v9  ;;  %v2843_v9 = vor.u32 %v3571_v59, %v2842_v58 }
  0x88   :  { %1406 = vmatpush.bf16.msrb.mxu2 %v2603_v20  ;;  %v2399_v20 = vor.u32 %v3457_v12, %v2396_v13  ;;  %v3597_v11 = vld [vmem:[#allocation2 + $0x4ec] sm:$0xf]  ;;  %v2956_v12 = vld [vmem:[#allocation2 + $0x4f8] sm:$0xf0]  ;;  %v2971_v13 = vor.u32 %v3603_v63, %v2970_v62 }
  0x89   :  { %1419 = vmatpush.bf16.msrb.mxu3 %v2731_v24  ;;  %v2527_v24 = vor.u32 %v3489_v14, %v2524_v15  ;;  %v2335_v14 = vor.u32 %v3441_v0, %v2332_v2  ;;  %v3629_v15 = vld [vmem:[#allocation2 + $0x5ec] sm:$0xf]  ;;  %v2959_v22 = vor.u32 %v3597_v11, %v2956_v12  ;;  %v2636_v62 = vld [vmem:[#allocation2 + $0x278] sm:$0xf0] }
  0x8a   :  { %v3549_v63 = vld [vmem:[#allocation2 + $0x36c] sm:$0xf] }
  0x8b   :  { %1381 = vmatpush.bf16.msrb.mxu0 %v2331_v32  ;;  %1394 = vmatpush.bf16.msrb.mxu1 %v2459_v37  ;;  %v3019_v32 = vor.u32 %v3615_v25, %v3018_v23  ;;  %v3002_v37 = vld [vmem:[#allocation2 + $0x548] sm:$0xf]  ;;  %v3529_v23 = vld [vmem:[#allocation2 + $0x2cc] sm:$0xf] }
  0x8c   :  { %1407 = vmatpush.bf16.msrb.mxu2 %v2587_v38  ;;  %v2511_v38 = vor.u32 %v3485_v28, %v2508_v30  ;;  %v3003_v45 = vor.u32 %v3611_v39, %v3002_v37  ;;  %v3561_v25 = vld [vmem:[#allocation2 + $0x3cc] sm:$0xf]  ;;  %v2940_v30 = vld [vmem:[#allocation2 + $0x4d8] sm:$0xf0] }
  0x8d   :  { %1420 = vmatpush.bf16.msrb.mxu3 %v2715_v41  ;;  %v2364_v41 = vld [vmem:[#allocation2 + $0x58] sm:$0xf0]  ;;  %v3593_v28 = vld [vmem:[#allocation2 + $0x4cc] sm:$0xf] }
  0x8e   :  { %1382 = vmatmul.bf16.vlgmr.msrb.gmra.mxu0 %v3841_v55  ;;  %1395 = vmatmul.bf16.vlgmr.msrb.gmra.mxu1 %v3847_v3  ;;  %v2367_v46 = vor.u32 %v3449_v40, %v2364_v41  ;;  %v3525_v37 = vld [vmem:[#allocation2 + $0x2ac] sm:$0xf]  ;;  %v2796_v41 = vld [vmem:[#allocation2 + $0x3b8] sm:$0xf0] }
  0x8f   :  { %1426 = vmatpush.bf16.msra.mxu0 %v2955_v42  ;;  %1439 = vmatpush.bf16.msra.mxu1 %v3083_v43  ;;  %v3481_v42 = vld [vmem:[#allocation2 + $0x14c] sm:$0xf]  ;;  %v2492_v43 = vld [vmem:[#allocation2 + $0x158] sm:$0xf0] }
  0x90   :  { %1452 = vmatpush.bf16.msra.mxu2 %v2447_v44  ;;  %1421 = vmatmul.bf16.vlgmr.msrb.gmra.mxu3 %v3858_v19  ;;  %v2875_v44 = vor.u32 %v3579_v36, %v2874_v35  ;;  %v2495_v50 = vor.u32 %v3481_v42, %v2492_v43  ;;  %v2815_v35 = vor.u32 %v3561_v25, %v2812_v27  ;;  %v3557_v39 = vld [vmem:[#allocation2 + $0x3ac] sm:$0xf]  ;;  %v2924_v43 = vld [vmem:[#allocation2 + $0x4b8] sm:$0xf0] }
  0x91   :  { %1465 = vmatpush.bf16.msra.mxu3 %v2575_v48  ;;  %1408 = vmatmul.bf16.vlgmr.msrb.gmra.mxu2 %v3856_v16  ;;  %v3575_v48 = vld [vmem:[#allocation2 + $0x434] sm:$0xf0]  ;;  %v2943_v36 = vor.u32 %v3593_v28, %v2940_v30  ;;  %v3589_v42 = vld [vmem:[#allocation2 + $0x4ac] sm:$0xf]  ;;  %v2604_v30 = vld [vmem:[#allocation2 + $0x238] sm:$0xf0] }
  0x92   :  { %v3581_v2 = vld [vmem:[#allocation2 + $0x46c] sm:$0xf] }
  0x93   :  { %1427 = vmatpush.bf16.msra.mxu0 %v2939_v54  ;;  %1440 = vmatpush.bf16.msra.mxu1 %v3067_v56  ;;  %v3477_v54 = vld [vmem:[#allocation2 + $0x12c] sm:$0xf]  ;;  %v2476_v56 = vld [vmem:[#allocation2 + $0x138] sm:$0xf0] }
  0x94   :  { %1453 = vmatpush.bf16.msra.mxu2 %v2431_v57  ;;  %v2859_v57 = vor.u32 %v3575_v48, %v2858_v47  ;;  %v2479_v1 = vor.u32 %v3477_v54, %v2476_v56  ;;  %v2799_v47 = vor.u32 %v3557_v39, %v2796_v41  ;;  %v2927_v48 = vor.u32 %v3589_v42, %v2924_v43  ;;  %v3585_v54 = vld [vmem:[#allocation2 + $0x48c] sm:$0xf]  ;;  %v2908_v56 = vld [vmem:[#allocation2 + $0x498] sm:$0xf0] }
  0x95   :  { %1466 = vmatpush.bf16.msra.mxu3 %v2559_v61  ;;  %v2351_v61 = vor.u32 %v3445_v52, %v2348_v53  ;;  %v2780_v53 = vld [vmem:[#allocation2 + $0x398] sm:$0xf0]  ;;  %v3509_v25 = vld [vmem:[#allocation2 + $0x22c] sm:$0xf] }
  0x96   :  { %v2607_v41 = vor.u32 %v3509_v25, %v2604_v30  ;;  %v3505_v42 = vld [vmem:[#allocation2 + $0x20c] sm:$0xf] }
  0x97   :  { %1428 = vmatpush.bf16.msra.mxu0 %v2923_v4  ;;  %1441 = vmatpush.bf16.msra.mxu1 %v3051_v5  ;;  %v3473_v4 = vld [vmem:[#allocation2 + $0x10c] sm:$0xf]  ;;  %v2460_v5 = vld [vmem:[#allocation2 + $0x118] sm:$0xf0] }
  0x98   :  { %1454 = vmatpush.bf16.msra.mxu2 %v2415_v6  ;;  %v3533_v6 = vld [vmem:[#allocation2 + $0x2ec] sm:$0xf] }
  0x99   :  { %1467 = vmatpush.bf16.msra.mxu3 %v2543_v10  ;;  %v2828_v10 = vld [vmem:[#allocation2 + $0x3f8] sm:$0xf0] }
  0x9a   :  { %v2831_v21 = vor.u32 %v3565_v8, %v2828_v10  ;;  %v2620_v10 = vld [vmem:[#allocation2 + $0x258] sm:$0xf0] }
  0x9b   :  { %1429 = vmatpush.bf16.msra.mxu0 %v2907_v17  ;;  %1442 = vmatpush.bf16.msra.mxu1 %v3035_v18  ;;  %v3084_v17 = vld [vmem:[#allocation2 + $0x5f8] sm:$0xf0]  ;;  %v2463_v18 = vor.u32 %v3473_v4, %v2460_v5  ;;  %v3613_v5 = vld [vmem:[#allocation2 + $0x56c] sm:$0xf] }
  0x9c   :  { %1455 = vmatpush.bf16.msra.mxu2 %v2399_v20  ;;  %v2703_v20 = vor.u32 %v3533_v6, %v2700_v7  ;;  %v3087_v26 = vor.u32 %v3629_v15, %v3084_v17  ;;  %v2892_v4 = vld [vmem:[#allocation2 + $0x478] sm:$0xf0]  ;;  %v3577_v15 = vld [vmem:[#allocation2 + $0x44c] sm:$0xf] }
  0x9d   :  { %1468 = vmatpush.bf16.msra.mxu3 %v2527_v24  ;;  %v2684_v24 = vld [vmem:[#allocation2 + $0x2d8] sm:$0xf0]  ;;  %v2895_v12 = vor.u32 %v3581_v2, %v2892_v4  ;;  %v3663_v2 = vld [vmem:[#allocation2 + $0x7ec] sm:$0xf0] }
  0x9e   :  { %v3020_v6 = vld [vmem:[#allocation2 + $0x578] sm:$0xf0] }
  0x9f   :  { %1430 = vmatpush.bf16.msra.mxu0 %v2891_v31  ;;  %1443 = vmatpush.bf16.msra.mxu1 %v3019_v32  ;;  %v3625_v31 = vld [vmem:[#allocation2 + $0x5cc] sm:$0xf]  ;;  %v3068_v32 = vld [vmem:[#allocation2 + $0x5d8] sm:$0xf0]  ;;  %v3023_v17 = vor.u32 %v3613_v5, %v3020_v6 }
  0xa0   :  { %1456 = vmatpush.bf16.msra.mxu2 %v2383_v34  ;;  %v2687_v34 = vor.u32 %v3529_v23, %v2684_v24  ;;  %v3071_v40 = vor.u32 %v3625_v31, %v3068_v32  ;;  %v3541_v31 = vld [vmem:[#allocation2 + $0x32c] sm:$0xf] }
  0xa1   :  { %1469 = vmatpush.bf16.msra.mxu3 %v2511_v38  ;;  %v2668_v38 = vld [vmem:[#allocation2 + $0x2b8] sm:$0xf0] }
  0xa3   :  { %1431 = vmatpush.bf16.msra.mxu0 %v2875_v44  ;;  %1444 = vmatpush.bf16.msra.mxu1 %v3003_v45  ;;  %v3621_v44 = vld [vmem:[#allocation2 + $0x5ac] sm:$0xf]  ;;  %v3052_v45 = vld [vmem:[#allocation2 + $0x5b8] sm:$0xf0] }
  0xa4   :  { %1457 = vmatpush.bf16.msra.mxu2 %v2367_v46  ;;  %v2671_v46 = vor.u32 %v3525_v37, %v2668_v38  ;;  %v3055_v52 = vor.u32 %v3621_v44, %v3052_v45  ;;  %v3605_v37 = vld [vmem:[#allocation2 + $0x52c] sm:$0xf]  ;;  %v2988_v38 = vld [vmem:[#allocation2 + $0x538] sm:$0xf0] }
  0xa5   :  { %1470 = vmatpush.bf16.msra.mxu3 %v2495_v50  ;;  %v2652_v50 = vld [vmem:[#allocation2 + $0x298] sm:$0xf0] }
  0xa6   :  { %v2655_v59 = vor.u32 %v3521_v49, %v2652_v50  ;;  %v2588_v45 = vld [vmem:[#allocation2 + $0x218] sm:$0xf0]  ;;  %v2991_v49 = vor.u32 %v3605_v37, %v2988_v38  ;;  %v3569_v50 = vld [vmem:[#allocation2 + $0x40c] sm:$0xf] }
  0xa7   :  { %1432 = vmatpush.bf16.msra.mxu0 %v2859_v57  ;;  %1445 = vmatpush.bf16.msra.mxu1 %v2987_v60  ;;  %v3617_v57 = vld [vmem:[#allocation2 + $0x58c] sm:$0xf]  ;;  %v2911_v60 = vor.u32 %v3585_v54, %v2908_v56  ;;  %v2972_v54 = vld [vmem:[#allocation2 + $0x518] sm:$0xf0]  ;;  %v3146_v56 = vld [vmem:[#allocation2 + $0x6e0] sm:$0xf] }
  0xa8   :  { %1458 = vmatpush.bf16.msra.mxu2 %v2351_v61  ;;  %v3517_v61 = vld [vmem:[#allocation2 + $0x26c] sm:$0xf] }
  0xa9   :  { %1471 = vmatpush.bf16.msra.mxu3 %v2479_v1  ;;  %v2764_v1 = vld [vmem:[#allocation2 + $0x378] sm:$0xf0]  ;;  %v2639_v8 = vor.u32 %v3517_v61, %v2636_v62 }
  0xaa   :  { %v2767_v11 = vor.u32 %v3549_v63, %v2764_v1  ;;  %v3645_v63 = vld [vmem:[#allocation2 + $0x6cc] sm:$0xf0]  ;;  %v3210_v1 = vld [vmem:[#allocation2 + $0x7e0] sm:$0xf] }
  0xab   :  { %1433 = vmatpush.bf16.msra.mxu0 %v2843_v9  ;;  %1446 = vmatpush.bf16.msra.mxu1 %v2971_v13  ;;  %v3890_v7 = vpop.f32.mrf.mxu1  ;;  %v3513_v9 = vld [vmem:[#allocation2 + $0x24c] sm:$0xf]  ;;  %v3211_v4 = vor.u32 %v3663_v2, %v3210_v1  ;;  %v3140_v1 = vld [vmem:[#allocation2 + $0x6d0] sm:$0xf0] }
  0xac   :  { %1459 = vmatpush.bf16.msra.mxu2 %v2335_v14  ;;  %v3545_v13 = vld [vmem:[#allocation2 + $0x34c] sm:$0xf]  ;;  %v2748_v14 = vld [vmem:[#allocation2 + $0x358] sm:$0xf0]  ;;  %v2623_v24 = vor.u32 %v3513_v9, %v2620_v10  ;;  %v3202_v10 = vld [vmem:[#allocation2 + $0x7c0] sm:$0xf] }
  0xad   :  { %1472 = vmatpush.bf16.msra.mxu3 %v2463_v18  ;;  %v2876_v18 = vld [vmem:[#allocation2 + $0x458] sm:$0xf0] }
  0xae   :  { %1434 = vmatmul.bf16.vlgmr.msra.gmra.mxu0 %v3868_v29  ;;  %1447 = vmatmul.bf16.vlgmr.msra.gmra.mxu1 %v3870_v33  ;;  %v2879_v27 = vor.u32 %v3577_v15, %v2876_v18  ;;  %v3122_v15 = vld [vmem:[#allocation2 + $0x680] sm:$0xf] }
  0xaf   :  { %1478 = vmatpush.bf16.msrb.mxu0 %v2703_v20  ;;  %1491 = vmatpush.bf16.msrb.mxu1 %v2831_v21  ;;  %v3888_v58 = vpop.f32.mrf.mxu0  ;;  %v3892_v20 = vld [vmem:[#allocation4] ss:$8 sm:$0xf]  ;;  %v3609_v21 = vld [vmem:[#allocation2 + $0x54c] sm:$0xf] }
  0xb0   :  { %1504 = vmatpush.bf16.msrb.mxu2 %v2959_v22  ;;  %1473 = vmatmul.bf16.vlgmr.msra.gmra.mxu3 %v3847_v3  ;;  %v2783_v3 = vor.u32 %v3553_v51, %v2780_v53  ;;  %v3004_v22 = vld [vmem:[#allocation2 + $0x558] sm:$0xf0]  ;;  %v250_v28 = vperm.slane %v3892_v20, 0  ;;  %v3194_v18 = vld [vmem:[#allocation2 + $0x7a0] sm:$0xf] }
  0xb1   :  { %1517 = vmatpush.bf16.msrb.mxu3 %v3087_v26  ;;  %1460 = vmatmul.bf16.vlgmr.msra.gmra.mxu2 %v3841_v55  ;;  %v3036_v55 = vld [vmem:[#allocation2 + $0x598] sm:$0xf0]  ;;  %v2751_v26 = vor.u32 %v3545_v13, %v2748_v14  ;;  %v3007_v32 = vor.u32 %v3609_v21, %v3004_v22  ;;  %v3659_v21 = vld [vmem:[#allocation2 + $0x7ac] sm:$0xf0] }
  0xb2   :  { %v3039_v0 = vor.u32 %v3617_v57, %v3036_v55  ;;  %v2844_v51 = vld [vmem:[#allocation2 + $0x418] sm:$0xf0]  ;;  %v3647_v57 = vld [vmem:[#allocation2 + $0x6ec] sm:$0xf0]  ;;  %v2591_v55 = vor.u32 %v3505_v42, %v2588_v45 }
  0xb3   :  { %1479 = vmatpush.bf16.msrb.mxu0 %v2687_v34  ;;  %1492 = vmatpush.bf16.msrb.mxu1 %v2815_v35  ;;  %v2732_v34 = vld [vmem:[#allocation2 + $0x338] sm:$0xf0]  ;;  %v3573_v35 = vld [vmem:[#allocation2 + $0x42c] sm:$0xf]  ;;  %v1242_v39 = vpop.f32.mrf.mxu1  ;;  %v1266_v53 = vpop.f32.mrf.mxu3  ;;  %v3147_v62 = vor.u32 %v3647_v57, %v3146_v56  ;;  %v3635_v45 = vld [vmem:[#allocation2 + $0x62c] sm:$0xf0] }
  0xb4   :  { %1505 = vmatpush.bf16.msrb.mxu2 %v2943_v36  ;;  %v2860_v36 = vld [vmem:[#allocation2 + $0x438] sm:$0xf0]  ;;  %v2735_v43 = vor.u32 %v3541_v31, %v2732_v34  ;;  %v3637_v34 = vld [vmem:[#allocation2 + $0x64c] sm:$0xf0]  ;;  %v3646_v56 = vld [vmem:[#allocation2 + $0x6e4] sm:$0xf] }
  0xb5   :  { %1518 = vmatpush.bf16.msrb.mxu3 %v3071_v40  ;;  %v2863_v44 = vor.u32 %v3573_v35, %v2860_v36  ;;  %v3178_v35 = vld [vmem:[#allocation2 + $0x760] sm:$0xf]  ;;  %v3655_v36 = vld [vmem:[#allocation2 + $0x76c] sm:$0xf0]  ;;  %v3148_v57 = vld [vmem:[#allocation2 + $0x6f0] sm:$0xf0] }
  0xb6   :  { %v3179_v39 = vor.u32 %v3655_v36, %v3178_v35  ;;  %v3654_v35 = vld [vmem:[#allocation2 + $0x764] sm:$0xf]  ;;  %v3180_v36 = vld [vmem:[#allocation2 + $0x770] sm:$0xf0] }
  0xb7   :  { %1480 = vmatpush.bf16.msrb.mxu0 %v2671_v46  ;;  %1493 = vmatpush.bf16.msrb.mxu1 %v2799_v47  ;;  %v1229_v23 = vpop.f32.mrf.mxu0  ;;  %v3537_v46 = vld [vmem:[#allocation2 + $0x30c] sm:$0xf]  ;;  %v2716_v47 = vld [vmem:[#allocation2 + $0x318] sm:$0xf0] }
  0xb8   :  { %1506 = vmatpush.bf16.msrb.mxu2 %v2927_v48  ;;  %v1253_v40 = vpop.f32.mrf.mxu2  ;;  %v1228_v48 = vadd.f32 %v3888_v58, %v250_v28  ;;  %v3138_v58 = vld [vmem:[#allocation2 + $0x6c0] sm:$0xf] }
  0xb9   :  { %1519 = vmatpush.bf16.msrb.mxu3 %v3055_v52  ;;  %v3601_v52 = vld [vmem:[#allocation2 + $0x50c] sm:$0xf]  ;;  %v3139_v5 = vor.u32 %v3645_v63, %v3138_v58  ;;  %v3644_v58 = vld [vmem:[#allocation2 + $0x6c4] sm:$0xf]  ;;  %v3154_v63 = vld [vmem:[#allocation2 + $0x700] sm:$0xf] }
  0xba   :  { %v2975_v61 = vor.u32 %v3601_v52, %v2972_v54  ;;  %v3162_v52 = vld [vmem:[#allocation2 + $0x720] sm:$0xf] }
  0xbb   :  { %1481 = vmatpush.bf16.msrb.mxu0 %v2655_v59  ;;  %1494 = vmatpush.bf16.msrb.mxu1 %v2783_v3  ;;  %v2719_v59 = vor.u32 %v3537_v46, %v2716_v47  ;;  %v2847_v3 = vor.u32 %v3569_v50, %v2844_v51  ;;  %v1268_v9 = vpop.f32.mrf.mxu3  ;;  %v3170_v46 = vld [vmem:[#allocation2 + $0x740] sm:$0xf]  ;;  %v3653_v47 = vld [vmem:[#allocation2 + $0x74c] sm:$0xf0] }
  0xbc   :  { %1507 = vmatpush.bf16.msrb.mxu2 %v2911_v60  ;;  %v1241_v60 = vadd.f32 %v3890_v7, %v1228_v48  ;;  %v3643_v7 = vld [vmem:[#allocation2 + $0x6ac] sm:$0xf0]  ;;  %v3171_v48 = vor.u32 %v3653_v47, %v3170_v46  ;;  %v3090_v50 = vld [vmem:[#allocation2 + $0x600] sm:$0xf]  ;;  %v3143_v9 = vor.u32 %v3644_v58, %v3140_v1  ;;  %v3172_v46 = vld [vmem:[#allocation2 + $0x750] sm:$0xf0] }
  0xbd   :  { %1520 = vmatpush.bf16.msrb.mxu3 %v3039_v0  ;;  %v3633_v51 = vld [vmem:[#allocation2 + $0x60c] sm:$0xf0]  ;;  %v3164_v58 = vld [vmem:[#allocation2 + $0x730] sm:$0xf0] }
  0xbe   :  { %v1254_v6 = vadd.f32 %v1253_v40, %v1241_v60 }
  0xbf   :  { %1482 = vmatpush.bf16.msrb.mxu0 %v2639_v8  ;;  %1495 = vmatpush.bf16.msrb.mxu1 %v2767_v11  ;;  %v3130_v8 = vld [vmem:[#allocation2 + $0x6a0] sm:$0xf]  ;;  %v3661_v11 = vld [vmem:[#allocation2 + $0x7cc] sm:$0xf0] }
  0xc0   :  { %1508 = vmatpush.bf16.msrb.mxu2 %v2895_v12  ;;  %v1255_v0 = vpop.f32.mrf.mxu2  ;;  %v3203_v12 = vor.u32 %v3661_v11, %v3202_v10  ;;  %v3131_v13 = vor.u32 %v3643_v7, %v3130_v8  ;;  %v1267_v14 = vadd.f32 %v1266_v53, %v1254_v6  ;;  %v3651_v53 = vld [vmem:[#allocation2 + $0x72c] sm:$0xf0]  ;;  %v251_v6 = vperm.slane %v3892_v20, 1  ;;  %v3642_v7 = vld [vmem:[#allocation2 + $0x6a4] sm:$0xf] }
  0xc1   :  { %1521 = vmatpush.bf16.msrb.mxu3 %v3023_v17  ;;  %v3641_v17 = vld [vmem:[#allocation2 + $0x68c] sm:$0xf0]  ;;  %v3132_v10 = vld [vmem:[#allocation2 + $0x6b0] sm:$0xf0]  ;;  %v3660_v11 = vld [vmem:[#allocation2 + $0x7c4] sm:$0xf] }
  0xc2   :  { %v3649_v0 = vld [vmem:[#allocation2 + $0x70c] sm:$0xf0] }
  0xc3   :  { %1483 = vmatpush.bf16.msrb.mxu0 %v2623_v24  ;;  %1496 = vmatpush.bf16.msrb.mxu1 %v2751_v26  ;;  %v3123_v24 = vor.u32 %v3641_v17, %v3122_v15  ;;  %v3639_v26 = vld [vmem:[#allocation2 + $0x66c] sm:$0xf0]  ;;  %v3155_v2 = vor.u32 %v3649_v0, %v3154_v63 }
  0xc4   :  { %1509 = vmatpush.bf16.msrb.mxu2 %v2879_v27  ;;  %v3657_v27 = vld [vmem:[#allocation2 + $0x78c] sm:$0xf0] }
  0xc5   :  { %1522 = vmatpush.bf16.msrb.mxu3 %v3007_v32  ;;  %v3106_v32 = vld [vmem:[#allocation2 + $0x640] sm:$0xf] }
  0xc6   :  { %v3107_v42 = vor.u32 %v3637_v34, %v3106_v32 }
  0xc7   :  { %1484 = vmatpush.bf16.msrb.mxu0 %v2607_v41  ;;  %1497 = vmatpush.bf16.msrb.mxu1 %v2735_v43  ;;  %v3098_v43 = vld [vmem:[#allocation2 + $0x620] sm:$0xf] }
  0xc8   :  { %1510 = vmatpush.bf16.msrb.mxu2 %v2863_v44 }
  0xc9   :  { %1523 = vmatpush.bf16.msrb.mxu3 %v2991_v49  ;;  %v3099_v49 = vor.u32 %v3635_v45, %v3098_v43  ;;  %v3652_v43 = vld [vmem:[#allocation2 + $0x744] sm:$0xf] }
  0xcb   :  { %1485 = vmatpush.bf16.msrb.mxu0 %v2591_v55  ;;  %1498 = vmatpush.bf16.msrb.mxu1 %v2719_v59  ;;  %v1279_v22 = vpop.f32.mrf.mxu0  ;;  %v1292_v25 = vpop.f32.mrf.mxu1  ;;  %v3163_v59 = vor.u32 %v3651_v53, %v3162_v52  ;;  %v3634_v53 = vld [vmem:[#allocation2 + $0x624] sm:$0xf] }
  0xcc   :  { %1511 = vmatpush.bf16.msrb.mxu2 %v2847_v3  ;;  %v1280_v23 = vadd.f32 %v1279_v22, %v1267_v14  ;;  %v3124_v22 = vld [vmem:[#allocation2 + $0x690] sm:$0xf0] }
  0xcd   :  { %1524 = vmatpush.bf16.msrb.mxu3 %v2975_v61  ;;  %v3091_v61 = vor.u32 %v3633_v51, %v3090_v50 }
  0xce   :  { %1486 = vmatmul.bf16.vlgmr.msrb.gmra.mxu0 %v3856_v16  ;;  %1499 = vmatmul.bf16.vlgmr.msrb.gmra.mxu1 %v3858_v19  ;;  %v3195_v16 = vor.u32 %v3659_v21, %v3194_v18  ;;  %v3114_v19 = vld [vmem:[#allocation2 + $0x660] sm:$0xf]  ;;  %v3135_v18 = vor.u32 %v3642_v7, %v3132_v10  ;;  %v3640_v21 = vld [vmem:[#allocation2 + $0x684] sm:$0xf]  ;;  %v3156_v7 = vld [vmem:[#allocation2 + $0x710] sm:$0xf0] }
  0xcf   :  { %1949 = vmatpush.bf16.msra.mxu0 %v3147_v62  ;;  %1962 = vmatpush.bf16.msra.mxu1 %v3211_v4  ;;  %v3115_v31 = vor.u32 %v3639_v26, %v3114_v19  ;;  %v3151_v62 = vor.u32 %v3646_v56, %v3148_v57  ;;  %v3662_v4 = vld [vmem:[#allocation2 + $0x7e4] sm:$0xf]  ;;  %v3127_v26 = vor.u32 %v3640_v21, %v3124_v22  ;;  %v3100_v57 = vld [vmem:[#allocation2 + $0x630] sm:$0xf0]  ;;  %v3242_v21 = vld [vmem:[#allocation2 + $0x860] sm:$0xf] }
  0xd0   :  { %1512 = vmatmul.bf16.vlgmr.msrb.gmra.mxu2 %v3868_v29  ;;  %1525 = vmatmul.bf16.vlgmr.msrb.gmra.mxu3 %v3870_v33  ;;  %v3186_v29 = vld [vmem:[#allocation2 + $0x780] sm:$0xf]  ;;  %v3901_v33 = vadd.f32 %v1292_v25, %v1280_v23  ;;  %v3658_v23 = vld [vmem:[#allocation2 + $0x7a4] sm:$0xf]  ;;  %v3103_v0 = vor.u32 %v3634_v53, %v3100_v57  ;;  %v3671_v22 = vld [vmem:[#allocation2 + $0x86c] sm:$0xf0] }
  0xd1   :  { %v3187_v28 = vor.u32 %v3657_v27, %v3186_v29  ;;  %v3638_v29 = vld [vmem:[#allocation2 + $0x664] sm:$0xf] }
  0xd2   :  { %v1530_v30 = vsub.f32 0.0, %v3901_v33 }
  0xd3   :  { %1950 = vmatpush.bf16.msra.mxu0 %v3139_v5  ;;  %1963 = vmatpush.bf16.msra.mxu1 %v3203_v12  ;;  %v1318_v40 = vpop.f32.mrf.mxu3  ;;  %v1281_v41 = vpop.f32.mrf.mxu0  ;;  %v3212_v5 = vld [vmem:[#allocation2 + $0x7f0] sm:$0xf0] }
  0xd4   :  { %v1534_v37 = vmul.f32 1.442695, %v1530_v30  ;;  %v1305_v38 = vpop.f32.mrf.mxu2  ;;  %v1294_v44 = vpop.f32.mrf.mxu1  ;;  %v3215_v8 = vor.u32 %v3662_v4, %v3212_v5  ;;  %v3204_v12 = vld [vmem:[#allocation2 + $0x7d0] sm:$0xf0]  ;;  %v3632_v4 = vld [vmem:[#allocation2 + $0x604] sm:$0xf] }
  0xd5   :  { %v1306_v14 = vadd.f32 %v1305_v38, %v251_v6  ;;  %v3207_v15 = vor.u32 %v3660_v11, %v3204_v12  ;;  %v3188_v30 = vld [vmem:[#allocation2 + $0x790] sm:$0xf0]  ;;  %v3679_v44 = vld [vmem:[#allocation2 + $0x8ec] sm:$0xf0] }
  0xd6   :  { %3724 = vpow2.f32 %v1534_v37  ;;  %v3108_v41 = vld [vmem:[#allocation2 + $0x650] sm:$0xf0] }
  0xd7   :  { %1951 = vmatpush.bf16.msra.mxu0 %v3131_v13  ;;  %1964 = vmatpush.bf16.msra.mxu1 %v3195_v16  ;;  %v1319_v25 = vadd.f32 %v1318_v40, %v1306_v14  ;;  %v3274_v40 = vld [vmem:[#allocation2 + $0x8e0] sm:$0xf]  ;;  %v3092_v5 = vld [vmem:[#allocation2 + $0x610] sm:$0xf0]  ;;  %v3673_v14 = vld [vmem:[#allocation2 + $0x88c] sm:$0xf0] }
  0xd8   :  { %v3275_v47 = vor.u32 %v3679_v44, %v3274_v40  ;;  %v3095_v11 = vor.u32 %v3632_v4, %v3092_v5  ;;  %v3670_v4 = vld [vmem:[#allocation2 + $0x864] sm:$0xf]  ;;  %v3244_v5 = vld [vmem:[#allocation2 + $0x870] sm:$0xf0] }
  0xda   :  { %1975 = vmatpush.bf16.msra.mxu2 %v3275_v47  ;;  %v3268_v47 = vld [vmem:[#allocation2 + $0x8d0] sm:$0xf0] }
  0xdb   :  { %1952 = vmatpush.bf16.msra.mxu0 %v3123_v24  ;;  %1965 = vmatpush.bf16.msra.mxu1 %v3187_v28  ;;  %v1320_v60 = vpop.f32.mrf.mxu3  ;;  %v3196_v24 = vld [vmem:[#allocation2 + $0x7b0] sm:$0xf0] }
  0xdc   :  { %v3725_v54 = vpop.eup %3724  ;;  %v1307_v55 = vpop.f32.mrf.mxu2  ;;  %v3199_v19 = vor.u32 %v3658_v23, %v3196_v24  ;;  %v3116_v28 = vld [vmem:[#allocation2 + $0x670] sm:$0xf0]  ;;  %v3675_v60 = vld [vmem:[#allocation2 + $0x8ac] sm:$0xf0]  ;;  %v3243_v23 = vor.u32 %v3671_v22, %v3242_v21 }
  0xdd   :  { %v1542_v3 = vadd.f32 1.0, %v3725_v54  ;;  %v3119_v38 = vor.u32 %v3638_v29, %v3116_v28  ;;  %v3234_v29 = vld [vmem:[#allocation2 + $0x840] sm:$0xf]  ;;  %v3687_v21 = vld [vmem:[#allocation2 + $0x96c] sm:$0xf0] }
  0xdf   :  { %1953 = vmatpush.bf16.msra.mxu0 %v3115_v31  ;;  %1966 = vmatpush.bf16.msra.mxu1 %v3179_v39  ;;  %3726 = vrcp.f32 %v1542_v3  ;;  %v3636_v39 = vld [vmem:[#allocation2 + $0x644] sm:$0xf]  ;;  %v3258_v3 = vld [vmem:[#allocation2 + $0x8a0] sm:$0xf] }
  0xe0   :  { %v3111_v52 = vor.u32 %v3636_v39, %v3108_v41  ;;  %v3259_v1 = vor.u32 %v3675_v60, %v3258_v3  ;;  %v252_v39 = vperm.slane %v3892_v20, 2  ;;  %v3678_v41 = vld [vmem:[#allocation2 + $0x8e4] sm:$0xf] }
  0xe3   :  { %1954 = vmatpush.bf16.msra.mxu0 %v3107_v42  ;;  %1967 = vmatpush.bf16.msra.mxu1 %v3171_v48  ;;  %v3183_v42 = vor.u32 %v3654_v35, %v3180_v36  ;;  %v3266_v48 = vld [vmem:[#allocation2 + $0x8c0] sm:$0xf] }
  0xe5   :  { %v3727_v13 = vpop.eup %3726 }
  0xe6   :  { %v1550_v17 = vmul.f32 %v3727_v13, %v3901_v33  ;;  %v3656_v33 = vld [vmem:[#allocation2 + $0x784] sm:$0xf]  ;;  %v3250_v13 = vld [vmem:[#allocation2 + $0x880] sm:$0xf] }
  0xe7   :  { %1955 = vmatpush.bf16.msra.mxu0 %v3099_v49  ;;  %1968 = vmatpush.bf16.msra.mxu1 %v3163_v59  ;;  %v3191_v34 = vor.u32 %v3656_v33, %v3188_v30  ;;  %v3677_v49 = vld [vmem:[#allocation2 + $0x8cc] sm:$0xf0]  ;;  %v3175_v59 = vor.u32 %v3652_v43, %v3172_v46  ;;  %v3226_v30 = vld [vmem:[#allocation2 + $0x820] sm:$0xf]  ;;  %v3676_v46 = vld [vmem:[#allocation2 + $0x8c4] sm:$0xf] }
  0xe8   :  { %v3906_v16 = vpack.c.bf16 %v1550_v17, %v1550_v17  ;;  %v3267_v54 = vor.u32 %v3677_v49, %v3266_v48  ;;  %v3271_v49 = vor.u32 %v3676_v46, %v3268_v47  ;;  %v3694_v46 = vld [vmem:[#allocation2 + $0x9e4] sm:$0xf]  ;;  %v3340_v47 = vld [vmem:[#allocation2 + $0x9f0] sm:$0xf0] }
  0xea   :  { %1976 = vmatpush.bf16.msra.mxu2 %v3267_v54  ;;  %v3674_v54 = vld [vmem:[#allocation2 + $0x8a4] sm:$0xf] }
  0xeb   :  { %1956 = vmatpush.bf16.msra.mxu0 %v3091_v61  ;;  %1969 = vmatpush.bf16.msra.mxu1 %v3155_v2  ;;  %v1331_v27 = vpop.f32.mrf.mxu0  ;;  %v1344_v32 = vpop.f32.mrf.mxu1 }
  0xec   :  { %v1332_v31 = vadd.f32 %v1331_v27, %v1319_v25  ;;  %v3669_v27 = vld [vmem:[#allocation2 + $0x84c] sm:$0xf0] }
  0xed   :  { %v3235_v33 = vor.u32 %v3669_v27, %v3234_v29  ;;  %v3298_v27 = vld [vmem:[#allocation2 + $0x940] sm:$0xf] }
  0xee   :  { %1957 = vmatmul.bf16.vlgmr.msra.gmra.mxu0 %v3906_v16  ;;  %v1345_v37 = vadd.f32 %v1344_v32, %v1332_v31  ;;  %1977 = vmatpush.bf16.msra.mxu2 %v3259_v1  ;;  %v3667_v31 = vld [vmem:[#allocation2 + $0x82c] sm:$0xf0] }
  0xef   :  { %2001 = vmatpush.bf16.msrb.mxu0 %v3151_v62  ;;  %2014 = vmatpush.bf16.msrb.mxu1 %v3215_v8  ;;  %v3650_v62 = vld [vmem:[#allocation2 + $0x724] sm:$0xf] }
  0xf0   :  { %v3167_v6 = vor.u32 %v3650_v62, %v3164_v58  ;;  %v3252_v62 = vld [vmem:[#allocation2 + $0x890] sm:$0xf0] }
  0xf3   :  { %2002 = vmatpush.bf16.msrb.mxu0 %v3143_v9  ;;  %2015 = vmatpush.bf16.msrb.mxu1 %v3207_v15  ;;  %v1370_v51 = vpop.f32.mrf.mxu3  ;;  %v1333_v55 = vpop.f32.mrf.mxu0  ;;  %v3648_v9 = vld [vmem:[#allocation2 + $0x704] sm:$0xf]  ;;  %v3251_v15 = vor.u32 %v3673_v14, %v3250_v13 }
  0xf4   :  { %v1357_v45 = vpop.f32.mrf.mxu2  ;;  %v1346_v61 = vpop.f32.mrf.mxu1  ;;  %v3159_v12 = vor.u32 %v3648_v9, %v3156_v7  ;;  %v3330_v55 = vld [vmem:[#allocation2 + $0x9c0] sm:$0xf]  ;;  %v3689_v9 = vld [vmem:[#allocation2 + $0x98c] sm:$0xf0] }
  0xf5   :  { %v1358_v50 = vadd.f32 %v1357_v45, %v1345_v37  ;;  %1978 = vmatpush.bf16.msra.mxu2 %v3251_v15  ;;  %v3218_v37 = vld [vmem:[#allocation2 + $0x800] sm:$0xf]  ;;  %v3672_v61 = vld [vmem:[#allocation2 + $0x884] sm:$0xf] }
  0xf6   :  { %v3255_v58 = vor.u32 %v3672_v61, %v3252_v62  ;;  %v3316_v61 = vld [vmem:[#allocation2 + $0x990] sm:$0xf0] }
  0xf7   :  { %2003 = vmatpush.bf16.msrb.mxu0 %v3135_v18  ;;  %2016 = vmatpush.bf16.msrb.mxu1 %v3199_v19  ;;  %v1371_v56 = vadd.f32 %v1370_v51, %v1358_v50  ;;  %v3338_v50 = vld [vmem:[#allocation2 + $0x9e0] sm:$0xf]  ;;  %v3695_v51 = vld [vmem:[#allocation2 + $0x9ec] sm:$0xf0] }
  0xf9   :  { %v1531_v63 = vsub.f32 0.0, %v1371_v56  ;;  %1979 = vmatpush.bf16.msra.mxu2 %v3243_v23 }
  0xfb   :  { %2004 = vmatpush.bf16.msrb.mxu0 %v3127_v26  ;;  %2017 = vmatpush.bf16.msrb.mxu1 %v3191_v34  ;;  %v1536_v2 = vmul.f32 1.442695, %v1531_v63  ;;  %v1372_v10 = vpop.f32.mrf.mxu3  ;;  %v3227_v34 = vor.u32 %v3667_v31, %v3226_v30  ;;  %v3322_v63 = vld [vmem:[#allocation2 + $0x9a0] sm:$0xf] }
  0xfc   :  { %v1359_v8 = vpop.f32.mrf.mxu2 }
  0xfd   :  { %3728 = vpow2.f32 %v1536_v2  ;;  %1980 = vmatpush.bf16.msra.mxu2 %v3235_v33  ;;  %v3314_v8 = vld [vmem:[#allocation2 + $0x980] sm:$0xf] }
  0xfe   :  { %v3315_v10 = vor.u32 %v3689_v9, %v3314_v8 }
  0xff   :  { %2005 = vmatpush.bf16.msrb.mxu0 %v3119_v38  ;;  %2018 = vmatpush.bf16.msrb.mxu1 %v3183_v42  ;;  %v3665_v38 = vld [vmem:[#allocation2 + $0x80c] sm:$0xf0]  ;;  %v3276_v42 = vld [vmem:[#allocation2 + $0x8f0] sm:$0xf0] }
 0x100   :  { %v3219_v40 = vor.u32 %v3665_v38, %v3218_v37  ;;  %v3279_v43 = vor.u32 %v3678_v41, %v3276_v42  ;;  %v3683_v37 = vld [vmem:[#allocation2 + $0x92c] sm:$0xf0]  ;;  %v3282_v41 = vld [vmem:[#allocation2 + $0x900] sm:$0xf] }
 0x101   :  { %1981 = vmatpush.bf16.msra.mxu2 %v3227_v34  ;;  %v3664_v34 = vld [vmem:[#allocation2 + $0x804] sm:$0xf]  ;;  %v3681_v42 = vld [vmem:[#allocation2 + $0x90c] sm:$0xf0] }
 0x103   :  { %2006 = vmatpush.bf16.msrb.mxu0 %v3111_v52  ;;  %2019 = vmatpush.bf16.msrb.mxu1 %v3175_v59  ;;  %v3729_v17 = vpop.eup %3728  ;;  %v3339_v52 = vor.u32 %v3695_v51, %v3338_v50  ;;  %v3693_v59 = vld [vmem:[#allocation2 + $0x9cc] sm:$0xf0]  ;;  %v3332_v50 = vld [vmem:[#allocation2 + $0x9d0] sm:$0xf0]  ;;  %v253_v51 = vperm.slane %v3892_v20, 3 }
 0x104   :  { %v1543_v18 = vadd.f32 1.0, %v3729_v17  ;;  %v3331_v3 = vor.u32 %v3693_v59, %v3330_v55  ;;  %v3686_v20 = vld [vmem:[#allocation2 + $0x964] sm:$0xf] }
 0x105   :  { %1982 = vmatpush.bf16.msra.mxu2 %v3219_v40  ;;  %1988 = vmatpush.bf16.msra.mxu3 %v3339_v52 }
 0x106   :  { %3730 = vrcp.f32 %v1543_v18  ;;  %v3306_v18 = vld [vmem:[#allocation2 + $0x960] sm:$0xf] }
 0x107   :  { %2007 = vmatpush.bf16.msrb.mxu0 %v3103_v0  ;;  %2020 = vmatpush.bf16.msrb.mxu1 %v3167_v6  ;;  %v3691_v0 = vld [vmem:[#allocation2 + $0x9ac] sm:$0xf0]  ;;  %v3247_v6 = vor.u32 %v3670_v4, %v3244_v5  ;;  %v3307_v22 = vor.u32 %v3687_v21, %v3306_v18  ;;  %v3684_v5 = vld [vmem:[#allocation2 + $0x944] sm:$0xf] }
 0x108   :  { %v3323_v1 = vor.u32 %v3691_v0, %v3322_v63  ;;  %v3680_v21 = vld [vmem:[#allocation2 + $0x904] sm:$0xf] }
 0x109   :  { %2027 = vmatpush.bf16.msrb.mxu2 %v3279_v43  ;;  %1989 = vmatpush.bf16.msra.mxu3 %v3331_v3 }
 0x10b   :  { %2008 = vmatpush.bf16.msrb.mxu0 %v3095_v11  ;;  %2021 = vmatpush.bf16.msrb.mxu1 %v3159_v12  ;;  %v1383_v25 = vpop.f32.mrf.mxu0  ;;  %v1396_v26 = vpop.f32.mrf.mxu1  ;;  %v3668_v11 = vld [vmem:[#allocation2 + $0x844] sm:$0xf]  ;;  %v3236_v12 = vld [vmem:[#allocation2 + $0x850] sm:$0xf0] }
 0x10c   :  { %v3731_v24 = vpop.eup %3730  ;;  %v1384_v44 = vadd.f32 %v1383_v25, %v252_v39  ;;  %v3239_v15 = vor.u32 %v3668_v11, %v3236_v12  ;;  %v3228_v25 = vld [vmem:[#allocation2 + $0x830] sm:$0xf0] }
 0x10d   :  { %v1551_v19 = vmul.f32 %v3731_v24, %v1371_v56  ;;  %2028 = vmatpush.bf16.msrb.mxu2 %v3271_v49  ;;  %v3260_v56 = vld [vmem:[#allocation2 + $0x8b0] sm:$0xf0]  ;;  %1990 = vmatpush.bf16.msra.mxu3 %v3323_v1  ;;  %v3666_v24 = vld [vmem:[#allocation2 + $0x824] sm:$0xf] }
 0x10e   :  { %2009 = vmatmul.bf16.vlgmr.msrb.gmra.mxu0 %v3906_v16  ;;  %v1397_v53 = vadd.f32 %v1396_v26, %v1384_v44  ;;  %v3263_v57 = vor.u32 %v3674_v54, %v3260_v56  ;;  %v3692_v49 = vld [vmem:[#allocation2 + $0x9c4] sm:$0xf]  ;;  %v3324_v56 = vld [vmem:[#allocation2 + $0x9b0] sm:$0xf0] }
 0x10f   :  { %v1621_v28 = vpack.c.bf16 %v1551_v19, %v1551_v19  ;;  %v3231_v19 = vor.u32 %v3666_v24, %v3228_v25  ;;  %v3335_v52 = vor.u32 %v3692_v49, %v3332_v50  ;;  %v3690_v54 = vld [vmem:[#allocation2 + $0x9a4] sm:$0xf]  ;;  %v3292_v11 = vld [vmem:[#allocation2 + $0x930] sm:$0xf0]  ;;  %v3370_v50 = vld [vmem:[#allocation2 + $0x6c8] sm:$0xf] }
 0x110   :  { %v3327_v59 = vor.u32 %v3690_v54, %v3324_v56  ;;  %v3701_v54 = vld [vmem:[#allocation2 + $0x6b4] sm:$0xf0] }
 0x111   :  { %1970 = vmatmul.bf16.vlgmr.msra.gmra.mxu1 %v1621_v28  ;;  %2029 = vmatpush.bf16.msrb.mxu2 %v3263_v57 }
 0x112   :  { %1991 = vmatpush.bf16.msra.mxu3 %v3315_v10  ;;  %v3682_v10 = vld [vmem:[#allocation2 + $0x924] sm:$0xf] }
 0x113   :  { %v1385_v16 = vpop.f32.mrf.mxu0  ;;  %v1422_v35 = vpop.f32.mrf.mxu3  ;;  %v3295_v18 = vor.u32 %v3682_v10, %v3292_v11  ;;  %v3398_v10 = vld [vmem:[#allocation2 + $0x7a8] sm:$0xf] }
 0x114   :  { %v1409_v32 = vpop.f32.mrf.mxu2  ;;  %v1398_v36 = vpop.f32.mrf.mxu1  ;;  %v3220_v16 = vld [vmem:[#allocation2 + $0x810] sm:$0xf0] }
 0x115   :  { %v1410_v60 = vadd.f32 %v1409_v32, %v1397_v53  ;;  %2030 = vmatpush.bf16.msrb.mxu2 %v3255_v58  ;;  %v3290_v36 = vld [vmem:[#allocation2 + $0x920] sm:$0xf] }
 0x116   :  { %1992 = vmatpush.bf16.msra.mxu3 %v3307_v22  ;;  %v3291_v38 = vor.u32 %v3683_v37, %v3290_v36  ;;  %v3284_v22 = vld [vmem:[#allocation2 + $0x910] sm:$0xf0] }
 0x117   :  { %v1423_v2 = vadd.f32 %v1422_v35, %v1410_v60  ;;  %v3223_v35 = vor.u32 %v3664_v34, %v3220_v16  ;;  %v3688_v60 = vld [vmem:[#allocation2 + $0x984] sm:$0xf]  ;;  %v3287_v25 = vor.u32 %v3680_v21, %v3284_v22  ;;  %v1619_v16 = vld [vmem:[#allocation4 + $0x1] ss:$8 sm:$0x3] }
 0x118   :  { %v3319_v63 = vor.u32 %v3688_v60, %v3316_v61  ;;  %v3358_v60 = vld [vmem:[#allocation2 + $0x668] sm:$0xf]  ;;  %v3699_v61 = vld [vmem:[#allocation2 + $0x674] sm:$0xf0] }
 0x119   :  { %2031 = vmatpush.bf16.msrb.mxu2 %v3247_v6  ;;  %v3300_v6 = vld [vmem:[#allocation2 + $0x950] sm:$0xf0]  ;;  %v3708_v22 = vld [vmem:[#allocation2 + $0x794] sm:$0xf0] }
 0x11a   :  { %v3303_v9 = vor.u32 %v3684_v5, %v3300_v6  ;;  %v3710_v6 = vld [vmem:[#allocation2 + $0x7d4] sm:$0xf0] }
 0x11b   :  { %v1424_v48 = vpop.f32.mrf.mxu3 }
 0x11c   :  { %v1411_v45 = vpop.f32.mrf.mxu2  ;;  %v3343_v48 = vor.u32 %v3694_v46, %v3340_v47  ;;  %v3374_v46 = vld [vmem:[#allocation2 + $0x6e8] sm:$0xf]  ;;  %v3703_v47 = vld [vmem:[#allocation2 + $0x6f4] sm:$0xf0] }
 0x11d   :  { %2032 = vmatpush.bf16.msrb.mxu2 %v3239_v15  ;;  %v3283_v45 = vor.u32 %v3681_v42, %v3282_v41  ;;  %v1626_v41 = vperm.slane %v1619_v16, 1 }
 0x121   :  { %2022 = vmatmul.bf16.vlgmr.msrb.gmra.mxu1 %v1621_v28  ;;  %v3685_v28 = vld [vmem:[#allocation2 + $0x94c] sm:$0xf0]  ;;  %2033 = vmatpush.bf16.msrb.mxu2 %v3231_v19 }
 0x122   :  { %v3299_v31 = vor.u32 %v3685_v28, %v3298_v27 }
 0x124   :  { %1993 = vmatpush.bf16.msra.mxu3 %v3299_v31 }
 0x125   :  { %2034 = vmatpush.bf16.msrb.mxu2 %v3223_v35  ;;  %v1625_v35 = vperm.slane %v1619_v16, 0 }
 0x128   :  { %1994 = vmatpush.bf16.msra.mxu3 %v3291_v38 }
 0x12b   :  { %v1435_v7 = vpop.f32.mrf.mxu0  ;;  %v1448_v14 = vpop.f32.mrf.mxu1 }
 0x12c   :  { %v1436_v13 = vadd.f32 %v1435_v7, %v1423_v2  ;;  %1995 = vmatpush.bf16.msra.mxu3 %v3283_v45  ;;  %v3308_v2 = vld [vmem:[#allocation2 + $0x970] sm:$0xf0] }
 0x12d   :  { %v3311_v4 = vor.u32 %v3686_v20, %v3308_v2  ;;  %v3354_v20 = vld [vmem:[#allocation2 + $0x648] sm:$0xf]  ;;  %v3698_v2 = vld [vmem:[#allocation2 + $0x654] sm:$0xf0] }
 0x12e   :  { %v1449_v17 = vadd.f32 %v1448_v14, %v1436_v13  ;;  %v3355_v5 = vor.u32 %v3698_v2, %v3354_v20  ;;  %v3422_v2 = vld [vmem:[#allocation2 + $0x868] sm:$0xf] }
 0x130   :  { %v1532_v23 = vsub.f32 0.0, %v1449_v17  ;;  %2040 = vmatpush.bf16.msrb.mxu3 %v3343_v48  ;;  %v3375_v48 = vor.u32 %v3703_v47, %v3374_v46 }
 0x132   :  { %v1538_v26 = vmul.f32 1.442695, %v1532_v23  ;;  %2196 = vmatpush.bf16.msra.mxu0 %v3375_v48 }
 0x133   :  { %v1474_v33 = vpop.f32.mrf.mxu3  ;;  %v1437_v30 = vpop.f32.mrf.mxu0 }
 0x134   :  { %v1461_v29 = vpop.f32.mrf.mxu2  ;;  %3732 = vpow2.f32 %v1538_v26  ;;  %v1450_v32 = vpop.f32.mrf.mxu1  ;;  %2041 = vmatpush.bf16.msrb.mxu3 %v3335_v52 }
 0x135   :  { %v1462_v55 = vadd.f32 %v1461_v29, %v253_v51  ;;  %v3702_v51 = vld [vmem:[#allocation2 + $0x6d4] sm:$0xf0] }
 0x136   :  { %v3371_v52 = vor.u32 %v3702_v51, %v3370_v50 }
 0x137   :  { %v1475_v62 = vadd.f32 %v1474_v33, %v1462_v55  ;;  %v3362_v55 = vld [vmem:[#allocation2 + $0x688] sm:$0xf] }
 0x138   :  { %2042 = vmatpush.bf16.msrb.mxu3 %v3327_v59  ;;  %2197 = vmatpush.bf16.msra.mxu0 %v3371_v52  ;;  %v3700_v59 = vld [vmem:[#allocation2 + $0x694] sm:$0xf0] }
 0x13a   :  { %v3733_v39 = vpop.eup %3732 }
 0x13b   :  { %v1544_v43 = vadd.f32 1.0, %v3733_v39  ;;  %v1476_v44 = vpop.f32.mrf.mxu3 }
 0x13c   :  { %v1463_v40 = vpop.f32.mrf.mxu2  ;;  %2043 = vmatpush.bf16.msrb.mxu3 %v3319_v63  ;;  %v3711_v63 = vld [vmem:[#allocation2 + $0x7f4] sm:$0xf0] }
 0x13d   :  { %3734 = vrcp.f32 %v1544_v43 }
 0x140   :  { %2044 = vmatpush.bf16.msrb.mxu3 %v3311_v4  ;;  %v3402_v4 = vld [vmem:[#allocation2 + $0x7c8] sm:$0xf] }
 0x143   :  { %v3735_v53 = vpop.eup %3734 }
 0x144   :  { %v1552_v57 = vmul.f32 %v3735_v53, %v1449_v17  ;;  %2045 = vmatpush.bf16.msrb.mxu3 %v3303_v9  ;;  %v3366_v53 = vld [vmem:[#allocation2 + $0x6a8] sm:$0xf] }
 0x145   :  { %v3367_v56 = vor.u32 %v3701_v54, %v3366_v53  ;;  %v3350_v9 = vld [vmem:[#allocation2 + $0x628] sm:$0xf] }
 0x146   :  { %v1622_v3 = vpack.c.bf16 %v1552_v57, %v1552_v57 }
 0x147   :  { %2198 = vmatpush.bf16.msra.mxu0 %v3367_v56 }
 0x148   :  { %1983 = vmatmul.bf16.vlgmr.msra.gmra.mxu2 %v1622_v3  ;;  %2046 = vmatpush.bf16.msrb.mxu3 %v3295_v18  ;;  %v3394_v18 = vld [vmem:[#allocation2 + $0x788] sm:$0xf] }
 0x14b   :  { %v1487_v58 = vpop.f32.mrf.mxu0  ;;  %v1500_v0 = vpop.f32.mrf.mxu1 }
 0x14c   :  { %v1488_v1 = vadd.f32 %v1487_v58, %v1475_v62  ;;  %2047 = vmatpush.bf16.msrb.mxu3 %v3287_v25  ;;  %v3406_v62 = vld [vmem:[#allocation2 + $0x7e8] sm:$0xf]  ;;  %v3359_v58 = vor.u32 %v3699_v61, %v3358_v60  ;;  %v3707_v25 = vld [vmem:[#allocation2 + $0x774] sm:$0xf0] }
 0x14d   :  { %v3718_v60 = vld [vmem:[#allocation2 + $0x8d4] sm:$0xf0] }
 0x14e   :  { %v1501_v8 = vadd.f32 %v1500_v0, %v1488_v1  ;;  %v3407_v1 = vor.u32 %v3711_v63, %v3406_v62  ;;  %v3430_v62 = vld [vmem:[#allocation2 + $0x8a8] sm:$0xf] }
 0x150   :  { %2209 = vmatpush.bf16.msra.mxu1 %v3407_v1  ;;  %v3716_v1 = vld [vmem:[#allocation2 + $0x894] sm:$0xf0] }
 0x153   :  { %v1513_v7 = vpop.f32.mrf.mxu2  ;;  %v1526_v13 = vpop.f32.mrf.mxu3 }
 0x154   :  { %v1514_v12 = vadd.f32 %v1513_v7, %v1501_v8  ;;  %v1489_v14 = vpop.f32.mrf.mxu0  ;;  %v1502_v15 = vpop.f32.mrf.mxu1  ;;  %v3403_v8 = vor.u32 %v3710_v6, %v3402_v4  ;;  %v3697_v7 = vld [vmem:[#allocation2 + $0x634] sm:$0xf0]  ;;  %v3418_v6 = vld [vmem:[#allocation2 + $0x848] sm:$0xf] }
 0x155   :  { %v3351_v11 = vor.u32 %v3697_v7, %v3350_v9  ;;  %v3346_v15 = vld [vmem:[#allocation2 + $0x608] sm:$0xf]  ;;  %v3715_v4 = vld [vmem:[#allocation2 + $0x874] sm:$0xf0] }
 0x156   :  { %v1527_v17 = vadd.f32 %v1526_v13, %v1514_v12  ;;  %2210 = vmatpush.bf16.msra.mxu1 %v3403_v8  ;;  %v3709_v12 = vld [vmem:[#allocation2 + $0x7b4] sm:$0xf0] }
 0x157   :  { %v3399_v14 = vor.u32 %v3709_v12, %v3398_v10  ;;  %v3714_v8 = vld [vmem:[#allocation2 + $0x854] sm:$0xf0]  ;;  %v3414_v10 = vld [vmem:[#allocation2 + $0x828] sm:$0xf] }
 0x158   :  { %v1533_v23 = vsub.f32 0.0, %v1527_v17  ;;  %2035 = vmatmul.bf16.vlgmr.msrb.gmra.mxu2 %v1622_v3  ;;  %v3363_v3 = vor.u32 %v3700_v59, %v3362_v55  ;;  %v3438_v55 = vld [vmem:[#allocation2 + $0x8e8] sm:$0xf]  ;;  %v3419_v9 = vor.u32 %v3714_v8, %v3418_v6 }
 0x15a   :  { %v1540_v24 = vmul.f32 1.442695, %v1533_v23  ;;  %2199 = vmatpush.bf16.msra.mxu0 %v3363_v3  ;;  %2211 = vmatpush.bf16.msra.mxu1 %v3399_v14  ;;  %v3395_v23 = vor.u32 %v3708_v22, %v3394_v18  ;;  %v3434_v3 = vld [vmem:[#allocation2 + $0x8c8] sm:$0xf]  ;;  %v3712_v14 = vld [vmem:[#allocation2 + $0x814] sm:$0xf0] }
 0x15b   :  { %v1515_v19 = vpop.f32.mrf.mxu2  ;;  %v1528_v26 = vpop.f32.mrf.mxu3  ;;  %v3435_v61 = vor.u32 %v3718_v60, %v3434_v3  ;;  %v2097_v18 = vld [vmem:[#allocation4 + $0x2] ss:$0 sm:$0xff] }
 0x15c   :  { %3736 = vpow2.f32 %v1540_v24  ;;  %v3390_v24 = vld [vmem:[#allocation2 + $0x768] sm:$0xf] }
 0x15d   :  { %v3391_v19 = vor.u32 %v3707_v25, %v3390_v24  ;;  %v3386_v26 = vld [vmem:[#allocation2 + $0x748] sm:$0xf] }
 0x15e   :  { %2200 = vmatpush.bf16.msra.mxu0 %v3359_v58  ;;  %2212 = vmatpush.bf16.msra.mxu1 %v3395_v23  ;;  %v3717_v58 = vld [vmem:[#allocation2 + $0x8b4] sm:$0xf0] }
 0x15f   :  { %v3431_v63 = vor.u32 %v3717_v58, %v3430_v62 }
 0x162   :  { %v3737_v29 = vpop.eup %3736  ;;  %2201 = vmatpush.bf16.msra.mxu0 %v3355_v5  ;;  %2213 = vmatpush.bf16.msra.mxu1 %v3391_v19  ;;  %v3423_v5 = vor.u32 %v3715_v4, %v3422_v2 }
 0x163   :  { %v1545_v27 = vadd.f32 1.0, %v3737_v29  ;;  %v3706_v29 = vld [vmem:[#allocation2 + $0x754] sm:$0xf0] }
 0x165   :  { %3738 = vrcp.f32 %v1545_v27 }
 0x166   :  { %2202 = vmatpush.bf16.msra.mxu0 %v3351_v11  ;;  %v3713_v11 = vld [vmem:[#allocation2 + $0x834] sm:$0xf0] }
 0x167   :  { %v3415_v12 = vor.u32 %v3713_v11, %v3414_v10 }
 0x16b   :  { %v3739_v28 = vpop.eup %3738  ;;  %v1958_v31 = vpop.f32.mrf.mxu0 }
 0x16c   :  { %v1553_v33 = vmul.f32 %v3739_v28, %v1527_v17  ;;  %v1959_v37 = vadd.f32 %v1958_v31, %v1625_v35  ;;  %v3696_v17 = vld [vmem:[#allocation2 + $0x614] sm:$0xf0]  ;;  %v3387_v28 = vor.u32 %v3706_v29, %v3386_v26  ;;  %v3382_v31 = vld [vmem:[#allocation2 + $0x728] sm:$0xf] }
 0x16d   :  { %v3347_v21 = vor.u32 %v3696_v17, %v3346_v15 }
 0x16e   :  { %v1623_v30 = vpack.c.bf16 %v1553_v33, %v1553_v33  ;;  %2214 = vmatpush.bf16.msra.mxu1 %v3387_v28 }
 0x16f   :  { %2203 = vmatpush.bf16.msra.mxu0 %v3347_v21 }
 0x170   :  { %1996 = vmatmul.bf16.vlgmr.msra.gmra.mxu3 %v1623_v30 }
 0x173   :  { %v1960_v32 = vpop.f32.mrf.mxu0 }
 0x174   :  { %v3705_v32 = vld [vmem:[#allocation2 + $0x734] sm:$0xf0] }
 0x175   :  { %v3383_v16 = vor.u32 %v3705_v32, %v3382_v31 }
 0x177   :  { %2215 = vmatpush.bf16.msra.mxu1 %v3383_v16 }
 0x180   :  { %2048 = vmatmul.bf16.vlgmr.msrb.gmra.mxu3 %v1623_v30 }
 0x18b   :  { %v2010_v34 = vpop.f32.mrf.mxu0 }
 0x18c   :  { %v2011_v42 = vadd.f32 %v2010_v34, %v1626_v41 }
 0x18e   :  { %v1971_v38 = vpop.f32.mrf.mxu1 }
 0x18f   :  { %v3912_v39 = vadd.f32 %v1971_v38, %v1959_v37  ;;  %v3704_v37 = vld [vmem:[#allocation2 + $0x714] sm:$0xf0] }
 0x193   :  { %v2012_v36 = vpop.f32.mrf.mxu0 }
 0x194   :  { %v3378_v36 = vld [vmem:[#allocation2 + $0x708] sm:$0xf] }
 0x195   :  { %v3379_v38 = vor.u32 %v3704_v37, %v3378_v36 }
 0x196   :  { %v1973_v40 = vpop.f32.mrf.mxu1 }
 0x197   :  { %2216 = vmatpush.bf16.msra.mxu1 %v3379_v38 }
 0x19e   :  { %v2023_v43 = vpop.f32.mrf.mxu1 }
 0x19f   :  { %v3914_v44 = vadd.f32 %v2023_v43, %v2011_v42 }
 0x1a6   :  { %v2025_v45 = vpop.f32.mrf.mxu1 }
 0x1cb   :  { %v1984_v49 = vpop.f32.mrf.mxu2 }
 0x1cc   :  { %v1985_v27 = vadd.f32 %v1984_v49, %v3912_v39 }
 0x1d3   :  { %v1986_v57 = vpop.f32.mrf.mxu2 }
 0x1db   :  { %v2036_v0 = vpop.f32.mrf.mxu2 }
 0x1dc   :  { %v2037_v39 = vadd.f32 %v2036_v0, %v3914_v44  ;;  %v3719_v44 = vld [vmem:[#allocation2 + $0x8f4] sm:$0xf0]  ;;  %v3426_v0 = vld [vmem:[#allocation2 + $0x888] sm:$0xf] }
 0x1dd   :  { %v3439_v59 = vor.u32 %v3719_v44, %v3438_v55  ;;  %v3427_v20 = vor.u32 %v3716_v1, %v3426_v0 }
 0x1df   :  { %2294 = vmatpush.bf16.msra.mxu2 %v3439_v59 }
 0x1e3   :  { %v2038_v13 = vpop.f32.mrf.mxu2  ;;  %2295 = vmatpush.bf16.msra.mxu2 %v3435_v61 }
 0x1e4   :  { %v3410_v13 = vld [vmem:[#allocation2 + $0x808] sm:$0xf] }
 0x1e5   :  { %v3411_v15 = vor.u32 %v3712_v14, %v3410_v13 }
 0x1e7   :  { %2296 = vmatpush.bf16.msra.mxu2 %v3431_v63 }
 0x1eb   :  { %2297 = vmatpush.bf16.msra.mxu2 %v3427_v20 }
 0x1ef   :  { %2298 = vmatpush.bf16.msra.mxu2 %v3423_v5 }
 0x1f3   :  { %v1997_v33 = vpop.f32.mrf.mxu3  ;;  %2299 = vmatpush.bf16.msra.mxu2 %v3419_v9 }
 0x1f4   :  { %v1998_v30 = vadd.f32 %v1997_v33, %v1985_v27 }
 0x1f6   :  { %v2053_v34 = vsub.f32 0.0, %v1998_v30 }
 0x1f7   :  { %2300 = vmatpush.bf16.msra.mxu2 %v3415_v12 }
 0x1f8   :  { %v2055_v35 = vmul.f32 1.442695, %v2053_v34 }
 0x1fa   :  { %3740 = vpow2.f32 %v2055_v35 }
 0x1fb   :  { %v1999_v40 = vpop.f32.mrf.mxu3  ;;  %2301 = vmatpush.bf16.msra.mxu2 %v3411_v15 }
 0x200   :  { %v3741_v41 = vpop.eup %3740 }
 0x201   :  { %v2059_v42 = vadd.f32 1.0, %v3741_v41 }
 0x203   :  { %3742 = vrcp.f32 %v2059_v42  ;;  %v2049_v43 = vpop.f32.mrf.mxu3 }
 0x204   :  { %v2050_v45 = vadd.f32 %v2049_v43, %v2037_v39 }
 0x206   :  { %v2054_v46 = vsub.f32 0.0, %v2050_v45 }
 0x208   :  { %v2057_v47 = vmul.f32 1.442695, %v2054_v46 }
 0x209   :  { %v3743_v48 = vpop.eup %3742 }
 0x20a   :  { %v2063_v49 = vmul.f32 %v3743_v48, %v1998_v30  ;;  %3744 = vpow2.f32 %v2057_v47  ;;  %v2244_v30 = vld [vmem:[#allocation4 + $0x3] ss:$0 sm:$0xff] }
 0x20b   :  { %v2051_v50 = vpop.f32.mrf.mxu3 }
 0x20c   :  { %v2098_v51 = vpack.c.bf16 %v2063_v49, %v2063_v49 }
 0x20e   :  { %2204 = vmatmul.bf16.vlgmr.msra.gmra.mxu0 %v2098_v51 }
 0x210   :  { %v3745_v52 = vpop.eup %3744 }
 0x211   :  { %v2060_v53 = vadd.f32 1.0, %v3745_v52 }
 0x213   :  { %3746 = vrcp.f32 %v2060_v53 }
 0x219   :  { %v3747_v54 = vpop.eup %3746 }
 0x21a   :  { %v2064_v56 = vmul.f32 %v3747_v54, %v2050_v45 }
 0x21c   :  { %v2099_v57 = vpack.c.bf16 %v2064_v56, %v2064_v56 }
 0x21e   :  { %2217 = vmatmul.bf16.vlgmr.msra.gmra.mxu1 %v2099_v57 }
 0x28b   :  { %v2205_v7 = vpop.f32.mrf.mxu0 }
 0x28c   :  { %v2206_v21 = vadd.f32 %v2205_v7, %v2097_v18 }
 0x293   :  { %v2207_v17 = vpop.f32.mrf.mxu0 }
 0x29b   :  { %v2218_v22 = vpop.f32.mrf.mxu1 }
 0x29c   :  { %v2219_v23 = vadd.f32 %v2218_v22, %v2206_v21 }
 0x29e   :  { %v2222_v24 = vsub.f32 0.0, %v2219_v23 }
 0x2a0   :  { %v2223_v25 = vmul.f32 1.442695, %v2222_v24 }
 0x2a2   :  { %3748 = vpow2.f32 %v2223_v25 }
 0x2a3   :  { %v2220_v19 = vpop.f32.mrf.mxu1 }
 0x2a8   :  { %v3749_v26 = vpop.eup %3748 }
 0x2a9   :  { %v2225_v29 = vadd.f32 1.0, %v3749_v26 }
 0x2ab   :  { %3750 = vrcp.f32 %v2225_v29 }
 0x2b1   :  { %v3751_v27 = vpop.eup %3750 }
 0x2b2   :  { %v2227_v28 = vmul.f32 %v3751_v27, %v2219_v23 }
 0x2b4   :  { %v2245_v33 = vpack.c.bf16 %v2227_v28, %v2227_v28 }
 0x2b6   :  { %2302 = vmatmul.bf16.vlgmr.msra.gmra.mxu2 %v2245_v33 }
 0x339   :  { %v2303_v31 = vpop.f32.mrf.mxu2 }
 0x33a   :  { %v2304_v32 = vadd.f32 %v2303_v31, %v2244_v30 }
 0x33c   :  { %v2307_v34 = vsub.f32 0.0, %v2304_v32 }
 0x33e   :  { %v2308_v16 = vmul.f32 1.442695, %v2307_v34 }
 0x340   :  { %3752 = vpow2.f32 %v2308_v16 }
 0x341   :  { %v2305_v35 = vpop.f32.mrf.mxu2 }
 0x346   :  { %v3753_v36 = vpop.eup %3752 }
 0x347   :  { %v2310_v37 = vadd.f32 1.0, %v3753_v36 }
 0x349   :  { %3754 = vrcp.f32 %v2310_v37 }
 0x34f   :  { %v3755_v38 = vpop.eup %3754 }
 0x350   :  { %v2312_v40 = vmul.f32 %v3755_v38, %v2304_v32 }
 0x352   :  { %2313 = vst [vmem:[%s3924_s3] sm:$0xff] %v2312_v40 }
 0x353   :  { %2318 = vsyncpa [#allocation3], 1 }
 0x354   :  { %2319 = vsyncpa [#allocation5], 1 }

</bundles_post_ra>
